<compile_context>
chip_gen: v7x
topology: tpu7x:2x2x1
jax: 0.10.0
libtpu: 0.0.40
codegen_flags: <defaults>
</compile_context>

<pallas_src>
import numpy as np
import jax
import jax.numpy as jnp
from jax.experimental import pallas as pl
from jax.experimental.pallas import tpu as pltpu


# ----------------------------------------------------------------------------- kernel
def olinear_cheby_kernel(x_ref, rw_ref, rb_ref, W1_ref, b1_ref,
                         Wc_ref, bf1_ref, Wf2_ref, bf2_ref, out_ref):
    f32 = jnp.float32
    mxu_dt = W1_ref.dtype                                       # bf16 or f32 weights

    x = x_ref[0].astype(f32)                                    # [T, C]   (C = channel tile)
    rw = rw_ref[...].astype(f32)                                # [1, C]
    rb = rb_ref[...].astype(f32)

    # ---- RevIN 'norm' (instance norm over time, affine) ----
    mean = jnp.mean(x, axis=0, keepdims=True)                   # [1, C]
    var = jnp.mean((x - mean) ** 2, axis=0, keepdims=True)
    std = jnp.sqrt(var + 1e-5)
    xn = (x - mean) * (rw / std) + rb                           # [T, C] f32

    # ---- tokenEmb + Chebyshev forward + ortho_trans[0], all folded into W1 ----
    xn_m = xn.astype(mxu_dt)
    z1 = (jnp.dot(W1_ref[...], xn_m, preferred_element_type=f32)
          + b1_ref[...])                                        # [d_model, C] f32

    # ---- encoder final LayerNorm (affine folded into Wc / bf1) ----
    mu = jnp.mean(z1, axis=0, keepdims=True)
    v = jnp.mean((z1 - mu) ** 2, axis=0, keepdims=True)
    ln = (z1 - mu) * jax.lax.rsqrt(v + 1e-5)                    # [d_model, C]

    # ---- merged matmul: [W2*g | M2] @ [ln ; xn]  (ortho_trans[2] + cheb-inv + residual + fc[0]) ----
    cat = jnp.concatenate([ln, xn], axis=0).astype(mxu_dt)      # [d_model+T, C]
    h = (jnp.dot(Wc_ref[...], cat, preferred_element_type=f32)
         + bf1_ref[...])                                        # [d_ff, C] f32

    # ---- exact-erf GELU (Abramowitz-Stegun 7.1.26); divide on EUP + 1 Newton step ----
    z = h * 0.7071067811865476
    az = jnp.abs(z)
    d = 1.0 + 0.3275911 * az
    t0 = pl.reciprocal(d, approx=True)                          # EUP slot
    t = t0 * (2.0 - d * t0)                                     # Newton refine (≈ f32 exact)
    poly = ((((1.061405429 * t - 1.453152027) * t + 1.421413741) * t
             - 0.284496736) * t + 0.254829592) * t
    erf_abs = 1.0 - poly * jnp.exp(-z * z)                      # exp on EUP
    erf_z = jnp.where(z >= 0.0, erf_abs, -erf_abs)
    h = 0.5 * h * (1.0 + erf_z)

    # ---- fc[2] ----
    o = (jnp.dot(Wf2_ref[...], h.astype(mxu_dt), preferred_element_type=f32)
         + bf2_ref[...])                                        # [P, C] f32

    # ---- dropout (eval: identity) + RevIN 'denorm' ----
    o = (o - rb) * (std / (rw + 1e-10)) + mean
    out_ref[0] = o.astype(out_ref.dtype)


# ----------------------------------------------------------------------------- wrapper
def _olinear_forward(x, p, *, n_tile=None, single_buffer_weights=True):
    """x: [B, T, N]  ->  out: [B, pred_len, N]   (matches the PyTorch forward)."""
    B, T, N = x.shape
    P = p["Wf2"].shape[0]
    d_model = p["W1"].shape[0]
    d_ff = p["Wc"].shape[0]

    # ---- lane-dense channel padding: unmasked stores + full MXU lanes ----
    N_pad = int(pl.cdiv(N, 128)) * 128
    if N_pad != N:
        pad = N_pad - N
        x = jnp.pad(x, ((0, 0), (0, 0), (0, pad)))
        rev_w = jnp.pad(p["rev_w"], ((0, 0), (0, pad)), constant_values=1.0)
        rev_b = jnp.pad(p["rev_b"], ((0, 0), (0, pad)))
    else:
        rev_w, rev_b = p["rev_w"], p["rev_b"]

    # ---- generation-aware VMEM budget (v5e/v6e 128 MiB, v7x 64 MiB) ----
    try:
        vmem_cap = int(pltpu.get_tpu_info().vmem_capacity_bytes)
    except Exception:
        vmem_cap = 64 << 20                       # conservative (v7x per-core)
    cap = (vmem_cap * 3) // 4                     # leave compiler headroom

    weight_keys = ("W1", "b1", "Wc", "bf1", "Wf2", "bf2")
    weight_bytes = sum(int(p[k].size) * p[k].dtype.itemsize for k in weight_keys)
    wmult = 1 if single_buffer_weights else 2

    # bytes per channel-column per grid step: double-buffered x / out blocks plus
    # f32 intermediates (xn, z1, ln, concat, h + GELU temps, o).
    per_col = (2 * (T + P) * x.dtype.itemsize
               + 4 * (2 * T + 3 * d_model + T + 4 * d_ff + 2 * P))

    if n_tile is None:
        n_tile = 128
        while (N_pad % (n_tile * 2) == 0 and n_tile * 2 <= min(N_pad, 1024)
               and wmult * weight_bytes + per_col * (n_tile * 2) + (4 << 20) <= cap):
            n_tile *= 2
    assert N_pad % n_tile == 0

    est = wmult * weight_bytes + per_col * n_tile + (4 << 20)
    vmem_limit = int(min(max(est, 16 << 20), cap))

    def wspec(name):
        arr = p[name]
        idx = lambda b, j, _nd=arr.ndim: (0,) * _nd
        if single_buffer_weights:
            # grid-invariant block index -> single-buffer to halve resident VMEM
            return pl.BlockSpec(arr.shape, idx, pipeline_mode=pl.Buffered(1))
        return pl.BlockSpec(arr.shape, idx)

    out = pl.pallas_call(
        olinear_cheby_kernel,
        out_shape=jax.ShapeDtypeStruct((B, P, N_pad), x.dtype),
        grid_spec=pltpu.PrefetchScalarGridSpec(
            num_scalar_prefetch=0,
            grid=(B, N_pad // n_tile),
            in_specs=[
                pl.BlockSpec((1, T, n_tile), lambda b, j: (b, 0, j)),   # x slab
                pl.BlockSpec((1, n_tile), lambda b, j: (0, j)),         # RevIN weight (per ch.)
                pl.BlockSpec((1, n_tile), lambda b, j: (0, j)),         # RevIN bias  (per ch.)
                wspec("W1"), wspec("b1"),
                wspec("Wc"), wspec("bf1"),
                wspec("Wf2"), wspec("bf2"),
            ],
            out_specs=pl.BlockSpec((1, P, n_tile), lambda b, j: (b, 0, j)),
        ),
        compiler_params=pltpu.CompilerParams(
            dimension_semantics=("parallel", "parallel"),
            vmem_limit_bytes=vmem_limit,
        ),
    )(x, rev_w, rev_b, p["W1"], p["b1"], p["Wc"], p["bf1"], p["Wf2"], p["bf2"])

    return out[:, :, :N] if N_pad != N else out                  # [B, pred_len, N]


def olinear_cheby_forward(x, p, *, n_tile=None):
    try:
        return _olinear_forward(x, p, n_tile=n_tile, single_buffer_weights=True)
    except Exception:
        # Fallback for JAX builds that reject pipeline_mode=pl.Buffered(1).
        return _olinear_forward(x, p, n_tile=n_tile, single_buffer_weights=False)


def cast_kernel_weights(p, dtype):
    """Store the large matmul weights in a narrower dtype (bf16 for v6e/v7x).

    Activations and accumulation stay f32; biases / RevIN params stay f32."""
    q = dict(p)
    for k in ("W1", "Wc", "Wf2"):
        q[k] = p[k].astype(dtype)
    return q


# ----------------------------------------------------------------------------- params
def make_params(key, *, seq_len, enc_in, embed_size, d_model, d_ff, pred_len):
    T, deg, E = seq_len, seq_len, embed_size

    # Chebyshev basis on linspace(-1,1,T)  (== numpy.polynomial.Chebyshev.basis)
    tv = np.linspace(-1.0, 1.0, T)
    cheb_np = np.zeros((deg, T), dtype=np.float64)
    cheb_np[0] = 1.0
    if deg > 1:
        cheb_np[1] = tv
    for i in range(2, deg):
        cheb_np[i] = 2.0 * tv * cheb_np[i - 1] - cheb_np[i - 2]
    wvec_np = np.pi * (1.0 - (np.arange(deg) == 0) * 0.5)
    A_np = cheb_np / (T * wvec_np[:, None])                     # forward:  coeffs_col = A @ xn_col

    cheb = jnp.asarray(cheb_np, jnp.float32)
    wvec = jnp.asarray(wvec_np, jnp.float32)
    A = jnp.asarray(A_np, jnp.float32)                          # [deg, T]

    ks = jax.random.split(key, 8)

    def lin(k, fan_in, shape):
        return jax.random.uniform(k, shape, jnp.float32, -1.0, 1.0) / np.sqrt(fan_in)

    emb = jax.random.normal(ks[0], (E,), jnp.float32)           # nn.Parameter(randn(1, E))
    W1t = lin(ks[1], deg * E, (deg * E, d_model))               # ortho_trans[0] (pre-transposed)
    b1 = lin(ks[2], deg * E, (1, d_model))
    W2t = lin(ks[3], d_model, (d_model, deg * E))               # ortho_trans[2]
    b2 = lin(ks[4], d_model, (1, deg * E))
    Wf1t = lin(ks[5], T * E, (T * E, d_ff))                     # fc[0]
    bf1 = lin(ks[6], T * E, (1, d_ff))
    Wf2t = lin(ks[7], d_ff, (d_ff, pred_len))                   # fc[2]
    bf2 = jnp.zeros((1, pred_len), jnp.float32)

    ln_g = jnp.ones((1, d_model), jnp.float32)                  # encoder final LayerNorm
    ln_b = jnp.zeros((1, d_model), jnp.float32)
    rev_w = jnp.ones((enc_in,), jnp.float32)                    # RevIN affine init
    rev_b = jnp.zeros((enc_in,), jnp.float32)

    # ---- parameter-algebra folds (pure setup, no data dependence) ----
    # (1) tokenEmb into ortho_trans[0]:  W1eff[d, m] = sum_e emb[e] * W1t[e*deg+d, m]
    W1eff = jnp.einsum("e,edm->dm", emb, W1t.reshape(E, deg, d_model))          # [deg, d_model]
    # (2) Chebyshev forward transform folded in:  z1_col = (W1eff.T @ A) @ xn_col
    W1k = W1eff.T @ A                                                           # [d_model, T]
    # (3) Chebyshev inverse + tokenEmb residual folded into fc[0]:
    Wf1_r = Wf1t.reshape(T, E, d_ff)
    M1 = (wvec[None, :, None]
          * jnp.einsum("dt,tef->edf", cheb, Wf1_r)).reshape(E * deg, d_ff)      # [E*deg, d_ff]
    M2k = jnp.einsum("e,tef->tf", emb, Wf1_r).T                                 # [d_ff, T]
    # (4) ortho_trans[2] folded through the inverse transform (z2 never materializes):
    W2k = (W2t @ M1).T                                                          # [d_ff, d_model]
    bf1k = (bf1 + b2 @ M1).T                                                    # [d_ff, 1]
    # (5) LayerNorm affine folded into the merged weight/bias:
    bf1k = bf1k + W2k @ ln_b.T                                                  # beta fold
    W2g = W2k * ln_g                                                            # gamma fold
    # (6) merge the short-K M2 matmul into W2 -> one [d_ff, d_model+T] weight:
    Wc = jnp.concatenate([W2g, M2k], axis=1)                                    # [d_ff, d_model+T]

    return dict(
        W1=W1k, b1=b1.T, Wc=Wc, bf1=bf1k,
        Wf2=Wf2t.T, bf2=bf2.T,
        rev_w=rev_w.reshape(1, enc_in), rev_b=rev_b.reshape(1, enc_in),
        raw=dict(emb=emb, W1t=W1t, b1=b1, ln_g=ln_g, ln_b=ln_b,
                 W2t=W2t, b2=b2, Wf1t=Wf1t, bf1=bf1, Wf2t=Wf2t, bf2=bf2,
                 rev_w=rev_w, rev_b=rev_b, cheb=cheb, wvec=wvec),
    )


# ----------------------------------------------------------------------------- reference
def reference_forward(x, p):
    """Literal (unfolded) pure-JAX re-implementation of Model.forward for checking."""
    r = p["raw"]
    emb, W1t, Wf1t, cheb, wvec = r["emb"], r["W1t"], r["Wf1t"], r["cheb"], r["wvec"]
    B, T, N = x.shape
    E, deg = emb.shape[0], cheb.shape[0]

    mean = x.mean(axis=1, keepdims=True)
    std = jnp.sqrt(x.var(axis=1, keepdims=True) + 1e-5)
    xn = (x - mean) / std * r["rev_w"] + r["rev_b"]             # [B,T,N]

    xe = xn.transpose(0, 2, 1)[..., None] * emb                 # tokenEmb  [B,N,T,E]
    xt = xe.transpose(0, 1, 3, 2)                               # [B,N,E,T]
    coeffs = jnp.einsum("bnet,dt->bned", xt, cheb) / T / wvec   # forward_transform
    flat = coeffs.reshape(B, N, E * deg)

    z1 = flat @ W1t + r["b1"]
    mu = z1.mean(-1, keepdims=True)
    v = z1.var(-1, keepdims=True)
    ln = (z1 - mu) / jnp.sqrt(v + 1e-5) * r["ln_g"] + r["ln_b"]
    z2 = ln @ r["W2t"] + r["b2"]

    c2 = z2.reshape(B, N, E, deg) * wvec
    rec = jnp.einsum("bned,dt->bnet", c2, cheb)                 # inverse_transform
    y = (rec.transpose(0, 1, 3, 2) + xe).reshape(B, N, T * E)   # residual + flatten

    h = y @ Wf1t + r["bf1"]
    h = 0.5 * h * (1.0 + jax.scipy.special.erf(h / jnp.sqrt(2.0)))
    o = (h @ r["Wf2t"] + r["bf2"]).transpose(0, 2, 1)           # [B,pred_len,N]
    o = (o - r["rev_b"]) / (r["rev_w"] + 1e-10) * std + mean
    return o


# ----------------------------------------------------------------------------- main
if __name__ == "__main__":
    # config: seq_len=8, enc_in=4, embed_size=4, d_model=32, d_ff=32, pred_len=8
    B, T, N = 2, 8, 4
    E, D_MODEL, D_FF, PRED = 4, 32, 32, 8

    key = jax.random.PRNGKey(0)
    k_p, k_x = jax.random.split(key)
    params = make_params(k_p, seq_len=T, enc_in=N, embed_size=E,
                         d_model=D_MODEL, d_ff=D_FF, pred_len=PRED)

    x = jax.random.normal(k_x, (B, T, N), jnp.float32)

    ref = reference_forward(x, params)

    # f32-weight path (tight check of the parameter folds)
    out = jax.block_until_ready(olinear_cheby_forward(x, params))
    assert out.shape == (B, PRED, N)
    np.testing.assert_allclose(np.asarray(out), np.asarray(ref), rtol=2e-3, atol=2e-4)

    # bf16-weight path (native-MXU dtype; halves weight DMA / VMEM on v6e / v7x)
    out_bf16 = jax.block_until_ready(
        olinear_cheby_forward(x, cast_kernel_weights(params, jnp.bfloat16)))
    np.testing.assert_allclose(np.asarray(out_bf16), np.asarray(ref), rtol=5e-2, atol=5e-2)

    print("KERNEL_OK")
</pallas_src>

<mosaic_0001>
module attributes {stable_mosaic.version = 11 : i64} {
  func.func @olinear_cheby_kernel(%arg0: i32, %arg1: i32, %arg2: memref<1x8x128xf32, #tpu.memory_space<vmem>>, %arg3: memref<1x128xf32, #tpu.memory_space<vmem>>, %arg4: memref<1x128xf32, #tpu.memory_space<vmem>>, %arg5: memref<32x8xf32, #tpu.memory_space<vmem>>, %arg6: memref<32x1xf32, #tpu.memory_space<vmem>>, %arg7: memref<32x40xf32, #tpu.memory_space<vmem>>, %arg8: memref<32x1xf32, #tpu.memory_space<vmem>>, %arg9: memref<8x32xf32, #tpu.memory_space<vmem>>, %arg10: memref<8x1xf32, #tpu.memory_space<vmem>>, %arg11: memref<1x8x128xf32, #tpu.memory_space<vmem>>) attributes {dimension_semantics = [#tpu.dimension_semantics<parallel>, #tpu.dimension_semantics<parallel>], iteration_bounds = array<i64: 2, 1>, scalar_prefetch = 0 : i64, scratch_operands = 0 : i64, tpu.core_type = #tpu.core_type<tc>, window_params = [{transform_indices = @transform_0, window_bounds = array<i64: 1, 8, 128>}, {transform_indices = @transform_1, window_bounds = array<i64: 1, 128>}, {transform_indices = @transform_2, window_bounds = array<i64: 1, 128>}, {pipeline_mode = #tpu.pipeline_mode<synchronous>, transform_indices = @transform_3, window_bounds = array<i64: 32, 8>}, {pipeline_mode = #tpu.pipeline_mode<synchronous>, transform_indices = @transform_4, window_bounds = array<i64: 32, 1>}, {pipeline_mode = #tpu.pipeline_mode<synchronous>, transform_indices = @transform_5, window_bounds = array<i64: 32, 40>}, {pipeline_mode = #tpu.pipeline_mode<synchronous>, transform_indices = @transform_6, window_bounds = array<i64: 32, 1>}, {pipeline_mode = #tpu.pipeline_mode<synchronous>, transform_indices = @transform_7, window_bounds = array<i64: 8, 32>}, {pipeline_mode = #tpu.pipeline_mode<synchronous>, transform_indices = @transform_8, window_bounds = array<i64: 8, 1>}, {transform_indices = @transform_9, window_bounds = array<i64: 1, 8, 128>}]} {
    %c0 = arith.constant 0 : index
    %c0_0 = arith.constant 0 : index
    %c0_1 = arith.constant 0 : index
    %0 = vector.load %arg2[%c0, %c0_0, %c0_1] : memref<1x8x128xf32, #tpu.memory_space<vmem>>, vector<1x8x128xf32>
    %1 = vector.shape_cast %0 : vector<1x8x128xf32> to vector<8x128xf32>
    %c0_2 = arith.constant 0 : index
    %c0_3 = arith.constant 0 : index
    %2 = vector.load %arg3[%c0_2, %c0_3] : memref<1x128xf32, #tpu.memory_space<vmem>>, vector<1x128xf32>
    %c0_4 = arith.constant 0 : index
    %c0_5 = arith.constant 0 : index
    %3 = vector.load %arg4[%c0_4, %c0_5] : memref<1x128xf32, #tpu.memory_space<vmem>>, vector<1x128xf32>
    %cst = arith.constant dense<0.000000e+00> : vector<128xf32>
    %4 = vector.multi_reduction <add>, %1, %cst [0] : vector<8x128xf32> to vector<128xf32>
    %5 = vector.shape_cast %4 : vector<128xf32> to vector<1x128xf32>
    %cst_6 = arith.constant 8.000000e+00 : f32
    %6 = vector.broadcast %cst_6 : f32 to vector<1x128xf32>
    %7 = arith.divf %5, %6 : vector<1x128xf32>
    %8 = vector.broadcast %7 : vector<1x128xf32> to vector<8x128xf32>
    %9 = arith.subf %1, %8 : vector<8x128xf32>
    %10 = arith.mulf %9, %9 : vector<8x128xf32>
    %cst_7 = arith.constant dense<0.000000e+00> : vector<128xf32>
    %11 = vector.multi_reduction <add>, %10, %cst_7 [0] : vector<8x128xf32> to vector<128xf32>
    %12 = vector.shape_cast %11 : vector<128xf32> to vector<1x128xf32>
    %cst_8 = arith.constant 8.000000e+00 : f32
    %13 = vector.broadcast %cst_8 : f32 to vector<1x128xf32>
    %14 = arith.divf %12, %13 : vector<1x128xf32>
    %cst_9 = arith.constant 9.99999974E-6 : f32
    %15 = vector.broadcast %cst_9 : f32 to vector<1x128xf32>
    %16 = arith.addf %14, %15 : vector<1x128xf32>
    %17 = math.sqrt %16 : vector<1x128xf32>
    %18 = vector.broadcast %7 : vector<1x128xf32> to vector<8x128xf32>
    %19 = arith.subf %1, %18 : vector<8x128xf32>
    %20 = arith.divf %2, %17 : vector<1x128xf32>
    %21 = vector.broadcast %20 : vector<1x128xf32> to vector<8x128xf32>
    %22 = arith.mulf %19, %21 : vector<8x128xf32>
    %23 = vector.broadcast %3 : vector<1x128xf32> to vector<8x128xf32>
    %24 = arith.addf %22, %23 : vector<8x128xf32>
    %c0_10 = arith.constant 0 : index
    %c0_11 = arith.constant 0 : index
    %25 = vector.load %arg5[%c0_10, %c0_11] : memref<32x8xf32, #tpu.memory_space<vmem>>, vector<32x8xf32>
    %cst_12 = arith.constant dense<0.000000e+00> : vector<32x128xf32>
    %26 = tpu.matmul %25, %24, %cst_12 {dimension_numbers = #tpu.dot_dimension_numbers<[1], [0], [0], [1], [0, 0, 1, 1], [], []>} : vector<32x8xf32>, vector<8x128xf32>, vector<32x128xf32> -> vector<32x128xf32>
    %c0_13 = arith.constant 0 : index
    %c0_14 = arith.constant 0 : index
    %27 = vector.load %arg6[%c0_13, %c0_14] : memref<32x1xf32, #tpu.memory_space<vmem>>, vector<32x1xf32>
    %28 = vector.broadcast %27 : vector<32x1xf32> to vector<32x128xf32>
    %29 = arith.addf %26, %28 : vector<32x128xf32>
    %cst_15 = arith.constant dense<0.000000e+00> : vector<128xf32>
    %30 = vector.multi_reduction <add>, %29, %cst_15 [0] : vector<32x128xf32> to vector<128xf32>
    %31 = vector.shape_cast %30 : vector<128xf32> to vector<1x128xf32>
    %cst_16 = arith.constant 3.200000e+01 : f32
    %32 = vector.broadcast %cst_16 : f32 to vector<1x128xf32>
    %33 = arith.divf %31, %32 : vector<1x128xf32>
    %34 = vector.broadcast %33 : vector<1x128xf32> to vector<32x128xf32>
    %35 = arith.subf %29, %34 : vector<32x128xf32>
    %36 = arith.mulf %35, %35 : vector<32x128xf32>
    %cst_17 = arith.constant dense<0.000000e+00> : vector<128xf32>
    %37 = vector.multi_reduction <add>, %36, %cst_17 [0] : vector<32x128xf32> to vector<128xf32>
    %38 = vector.shape_cast %37 : vector<128xf32> to vector<1x128xf32>
    %cst_18 = arith.constant 3.200000e+01 : f32
    %39 = vector.broadcast %cst_18 : f32 to vector<1x128xf32>
    %40 = arith.divf %38, %39 : vector<1x128xf32>
    %41 = vector.broadcast %33 : vector<1x128xf32> to vector<32x128xf32>
    %42 = arith.subf %29, %41 : vector<32x128xf32>
    %cst_19 = arith.constant 9.99999974E-6 : f32
    %43 = vector.broadcast %cst_19 : f32 to vector<1x128xf32>
    %44 = arith.addf %40, %43 : vector<1x128xf32>
    %45 = math.rsqrt %44 : vector<1x128xf32>
    %46 = vector.broadcast %45 : vector<1x128xf32> to vector<32x128xf32>
    %47 = arith.mulf %42, %46 : vector<32x128xf32>
    %48 = tpu.concatenate %47, %24 in 0 : vector<32x128xf32>, vector<8x128xf32> -> vector<40x128xf32>
    %c0_20 = arith.constant 0 : index
    %c0_21 = arith.constant 0 : index
    %49 = vector.load %arg7[%c0_20, %c0_21] : memref<32x40xf32, #tpu.memory_space<vmem>>, vector<32x40xf32>
    %cst_22 = arith.constant dense<0.000000e+00> : vector<32x128xf32>
    %50 = tpu.matmul %49, %48, %cst_22 {dimension_numbers = #tpu.dot_dimension_numbers<[1], [0], [0], [1], [0, 0, 1, 1], [], []>} : vector<32x40xf32>, vector<40x128xf32>, vector<32x128xf32> -> vector<32x128xf32>
    %c0_23 = arith.constant 0 : index
    %c0_24 = arith.constant 0 : index
    %51 = vector.load %arg8[%c0_23, %c0_24] : memref<32x1xf32, #tpu.memory_space<vmem>>, vector<32x1xf32>
    %52 = vector.broadcast %51 : vector<32x1xf32> to vector<32x128xf32>
    %53 = arith.addf %50, %52 : vector<32x128xf32>
    %cst_25 = arith.constant 0.707106769 : f32
    %54 = vector.broadcast %cst_25 : f32 to vector<32x128xf32>
    %55 = arith.mulf %53, %54 : vector<32x128xf32>
    %56 = math.absf %55 : vector<32x128xf32>
    %cst_26 = arith.constant 0.327591091 : f32
    %57 = vector.broadcast %cst_26 : f32 to vector<32x128xf32>
    %58 = arith.mulf %57, %56 : vector<32x128xf32>
    %cst_27 = arith.constant 1.000000e+00 : f32
    %59 = vector.broadcast %cst_27 : f32 to vector<32x128xf32>
    %60 = arith.addf %59, %58 : vector<32x128xf32>
    %61 = tpu.reciprocal %60 {approx = true} : vector<32x128xf32> -> vector<32x128xf32>
    %62 = arith.mulf %60, %61 : vector<32x128xf32>
    %cst_28 = arith.constant 2.000000e+00 : f32
    %63 = vector.broadcast %cst_28 : f32 to vector<32x128xf32>
    %64 = arith.subf %63, %62 : vector<32x128xf32>
    %65 = arith.mulf %61, %64 : vector<32x128xf32>
    %cst_29 = arith.constant 1.06140542 : f32
    %66 = vector.broadcast %cst_29 : f32 to vector<32x128xf32>
    %67 = arith.mulf %66, %65 : vector<32x128xf32>
    %cst_30 = arith.constant 1.45315206 : f32
    %68 = vector.broadcast %cst_30 : f32 to vector<32x128xf32>
    %69 = arith.subf %67, %68 : vector<32x128xf32>
    %70 = arith.mulf %69, %65 : vector<32x128xf32>
    %cst_31 = arith.constant 1.42141378 : f32
    %71 = vector.broadcast %cst_31 : f32 to vector<32x128xf32>
    %72 = arith.addf %70, %71 : vector<32x128xf32>
    %73 = arith.mulf %72, %65 : vector<32x128xf32>
    %cst_32 = arith.constant 0.284496725 : f32
    %74 = vector.broadcast %cst_32 : f32 to vector<32x128xf32>
    %75 = arith.subf %73, %74 : vector<32x128xf32>
    %76 = arith.mulf %75, %65 : vector<32x128xf32>
    %cst_33 = arith.constant 0.254829586 : f32
    %77 = vector.broadcast %cst_33 : f32 to vector<32x128xf32>
    %78 = arith.addf %76, %77 : vector<32x128xf32>
    %79 = arith.mulf %78, %65 : vector<32x128xf32>
    %cst_34 = arith.constant 0.000000e+00 : f32
    %80 = vector.broadcast %cst_34 : f32 to vector<32x128xf32>
    %81 = arith.subf %80, %55 : vector<32x128xf32>
    %82 = arith.mulf %81, %55 : vector<32x128xf32>
    %83 = math.exp %82 : vector<32x128xf32>
    %84 = arith.mulf %79, %83 : vector<32x128xf32>
    %cst_35 = arith.constant 1.000000e+00 : f32
    %85 = vector.broadcast %cst_35 : f32 to vector<32x128xf32>
    %86 = arith.subf %85, %84 : vector<32x128xf32>
    %cst_36 = arith.constant 0.000000e+00 : f32
    %87 = vector.broadcast %cst_36 : f32 to vector<32x128xf32>
    %88 = arith.cmpf oge, %55, %87 : vector<32x128xf32>
    %cst_37 = arith.constant 0.000000e+00 : f32
    %89 = vector.broadcast %cst_37 : f32 to vector<32x128xf32>
    %90 = arith.subf %89, %86 : vector<32x128xf32>
    %91 = arith.select %88, %86, %90 : vector<32x128xi1>, vector<32x128xf32>
    %cst_38 = arith.constant 5.000000e-01 : f32
    %92 = vector.broadcast %cst_38 : f32 to vector<32x128xf32>
    %93 = arith.mulf %92, %53 : vector<32x128xf32>
    %cst_39 = arith.constant 1.000000e+00 : f32
    %94 = vector.broadcast %cst_39 : f32 to vector<32x128xf32>
    %95 = arith.addf %94, %91 : vector<32x128xf32>
    %96 = arith.mulf %93, %95 : vector<32x128xf32>
    %c0_40 = arith.constant 0 : index
    %c0_41 = arith.constant 0 : index
    %97 = vector.load %arg9[%c0_40, %c0_41] : memref<8x32xf32, #tpu.memory_space<vmem>>, vector<8x32xf32>
    %cst_42 = arith.constant dense<0.000000e+00> : vector<8x128xf32>
    %98 = tpu.matmul %97, %96, %cst_42 {dimension_numbers = #tpu.dot_dimension_numbers<[1], [0], [0], [1], [0, 0, 1, 1], [], []>} : vector<8x32xf32>, vector<32x128xf32>, vector<8x128xf32> -> vector<8x128xf32>
    %c0_43 = arith.constant 0 : index
    %c0_44 = arith.constant 0 : index
    %99 = vector.load %arg10[%c0_43, %c0_44] : memref<8x1xf32, #tpu.memory_space<vmem>>, vector<8x1xf32>
    %100 = vector.broadcast %99 : vector<8x1xf32> to vector<8x128xf32>
    %101 = arith.addf %98, %100 : vector<8x128xf32>
    %102 = vector.broadcast %3 : vector<1x128xf32> to vector<8x128xf32>
    %103 = arith.subf %101, %102 : vector<8x128xf32>
    %cst_45 = arith.constant 1.000000e-10 : f32
    %104 = vector.broadcast %cst_45 : f32 to vector<1x128xf32>
    %105 = arith.addf %2, %104 : vector<1x128xf32>
    %106 = arith.divf %17, %105 : vector<1x128xf32>
    %107 = vector.broadcast %106 : vector<1x128xf32> to vector<8x128xf32>
    %108 = arith.mulf %103, %107 : vector<8x128xf32>
    %109 = vector.broadcast %7 : vector<1x128xf32> to vector<8x128xf32>
    %110 = arith.addf %108, %109 : vector<8x128xf32>
    %c0_46 = arith.constant 0 : index
    %c0_47 = arith.constant 0 : index
    %c0_48 = arith.constant 0 : index
    %111 = vector.load %arg11[%c0_46, %c0_47, %c0_48] : memref<1x8x128xf32, #tpu.memory_space<vmem>>, vector<1x8x128xf32>
    %112 = vector.shape_cast %111 : vector<1x8x128xf32> to vector<8x128xf32>
    %113 = vector.shape_cast %110 : vector<8x128xf32> to vector<1x8x128xf32>
    tpu.vector_store %arg11[%c0_46, %c0_47, %c0_48], %113 {strides = array<i32>} : memref<1x8x128xf32, #tpu.memory_space<vmem>>, vector<1x8x128xf32>,
    return
  }
  func.func @transform_0(%arg0: i32, %arg1: i32) -> (i32, i32, i32) {
    %c0_i32 = arith.constant 0 : i32
    %c0_i32_0 = arith.constant 0 : i32
    return %arg0, %c0_i32, %arg1 : i32, i32, i32
  }
  func.func @transform_1(%arg0: i32, %arg1: i32) -> (i32, i32) {
    %c0_i32 = arith.constant 0 : i32
    %c0_i32_0 = arith.constant 0 : i32
    return %c0_i32, %arg1 : i32, i32
  }
  func.func @transform_2(%arg0: i32, %arg1: i32) -> (i32, i32) {
    %c0_i32 = arith.constant 0 : i32
    %c0_i32_0 = arith.constant 0 : i32
    return %c0_i32, %arg1 : i32, i32
  }
  func.func @transform_3(%arg0: i32, %arg1: i32) -> (i32, i32) {
    %c0_i32 = arith.constant 0 : i32
    %c0_i32_0 = arith.constant 0 : i32
    %c0_i32_1 = arith.constant 0 : i32
    return %c0_i32, %c0_i32_0 : i32, i32
  }
  func.func @transform_4(%arg0: i32, %arg1: i32) -> (i32, i32) {
    %c0_i32 = arith.constant 0 : i32
    %c0_i32_0 = arith.constant 0 : i32
    %c0_i32_1 = arith.constant 0 : i32
    return %c0_i32, %c0_i32_0 : i32, i32
  }
  func.func @transform_5(%arg0: i32, %arg1: i32) -> (i32, i32) {
    %c0_i32 = arith.constant 0 : i32
    %c0_i32_0 = arith.constant 0 : i32
    %c0_i32_1 = arith.constant 0 : i32
    return %c0_i32, %c0_i32_0 : i32, i32
  }
  func.func @transform_6(%arg0: i32, %arg1: i32) -> (i32, i32) {
    %c0_i32 = arith.constant 0 : i32
    %c0_i32_0 = arith.constant 0 : i32
    %c0_i32_1 = arith.constant 0 : i32
    return %c0_i32, %c0_i32_0 : i32, i32
  }
  func.func @transform_7(%arg0: i32, %arg1: i32) -> (i32, i32) {
    %c0_i32 = arith.constant 0 : i32
    %c0_i32_0 = arith.constant 0 : i32
    %c0_i32_1 = arith.constant 0 : i32
    return %c0_i32, %c0_i32_0 : i32, i32
  }
  func.func @transform_8(%arg0: i32, %arg1: i32) -> (i32, i32) {
    %c0_i32 = arith.constant 0 : i32
    %c0_i32_0 = arith.constant 0 : i32
    %c0_i32_1 = arith.constant 0 : i32
    return %c0_i32, %c0_i32_0 : i32, i32
  }
  func.func @transform_9(%arg0: i32, %arg1: i32) -> (i32, i32, i32) {
    %c0_i32 = arith.constant 0 : i32
    %c0_i32_0 = arith.constant 0 : i32
    return %arg0, %c0_i32, %arg1 : i32, i32, i32
  }
}

module attributes {stable_mosaic.version = 11 : i64} {
  func.func @olinear_cheby_kernel(%arg0: i32, %arg1: i32, %arg2: memref<1x8x128xf32, #tpu.memory_space<vmem>>, %arg3: memref<1x128xf32, #tpu.memory_space<vmem>>, %arg4: memref<1x128xf32, #tpu.memory_space<vmem>>, %arg5: memref<32x8xf32, #tpu.memory_space<vmem>>, %arg6: memref<32x1xf32, #tpu.memory_space<vmem>>, %arg7: memref<32x40xf32, #tpu.memory_space<vmem>>, %arg8: memref<32x1xf32, #tpu.memory_space<vmem>>, %arg9: memref<8x32xf32, #tpu.memory_space<vmem>>, %arg10: memref<8x1xf32, #tpu.memory_space<vmem>>, %arg11: memref<1x8x128xf32, #tpu.memory_space<vmem>>) attributes {dimension_semantics = [#tpu.dimension_semantics<parallel>, #tpu.dimension_semantics<parallel>], iteration_bounds = array<i64: 2, 1>, scalar_prefetch = 0 : i64, scratch_operands = 0 : i64, tpu.core_type = #tpu.core_type<tc>, window_params = [{transform_indices = @transform_0, window_bounds = array<i64: 1, 8, 128>}, {transform_indices = @transform_1, window_bounds = array<i64: 1, 128>}, {transform_indices = @transform_2, window_bounds = array<i64: 1, 128>}, {pipeline_mode = #tpu.pipeline_mode<synchronous>, transform_indices = @transform_3, window_bounds = array<i64: 32, 8>}, {pipeline_mode = #tpu.pipeline_mode<synchronous>, transform_indices = @transform_4, window_bounds = array<i64: 32, 1>}, {pipeline_mode = #tpu.pipeline_mode<synchronous>, transform_indices = @transform_5, window_bounds = array<i64: 32, 40>}, {pipeline_mode = #tpu.pipeline_mode<synchronous>, transform_indices = @transform_6, window_bounds = array<i64: 32, 1>}, {pipeline_mode = #tpu.pipeline_mode<synchronous>, transform_indices = @transform_7, window_bounds = array<i64: 8, 32>}, {pipeline_mode = #tpu.pipeline_mode<synchronous>, transform_indices = @transform_8, window_bounds = array<i64: 8, 1>}, {transform_indices = @transform_9, window_bounds = array<i64: 1, 8, 128>}]} {
    %c0 = arith.constant 0 : index
    %c0_0 = arith.constant 0 : index
    %c0_1 = arith.constant 0 : index
    %0 = vector.load %arg2[%c0, %c0_0, %c0_1] : memref<1x8x128xf32, #tpu.memory_space<vmem>>, vector<1x8x128xf32>
    %1 = vector.shape_cast %0 : vector<1x8x128xf32> to vector<8x128xf32>
    %c0_2 = arith.constant 0 : index
    %c0_3 = arith.constant 0 : index
    %2 = vector.load %arg3[%c0_2, %c0_3] : memref<1x128xf32, #tpu.memory_space<vmem>>, vector<1x128xf32>
    %c0_4 = arith.constant 0 : index
    %c0_5 = arith.constant 0 : index
    %3 = vector.load %arg4[%c0_4, %c0_5] : memref<1x128xf32, #tpu.memory_space<vmem>>, vector<1x128xf32>
    %cst = arith.constant dense<0.000000e+00> : vector<128xf32>
    %4 = vector.multi_reduction <add>, %1, %cst [0] : vector<8x128xf32> to vector<128xf32>
    %5 = vector.shape_cast %4 : vector<128xf32> to vector<1x128xf32>
    %cst_6 = arith.constant 8.000000e+00 : f32
    %6 = vector.broadcast %cst_6 : f32 to vector<1x128xf32>
    %7 = arith.divf %5, %6 : vector<1x128xf32>
    %8 = vector.broadcast %7 : vector<1x128xf32> to vector<8x128xf32>
    %9 = arith.subf %1, %8 : vector<8x128xf32>
    %10 = arith.mulf %9, %9 : vector<8x128xf32>
    %cst_7 = arith.constant dense<0.000000e+00> : vector<128xf32>
    %11 = vector.multi_reduction <add>, %10, %cst_7 [0] : vector<8x128xf32> to vector<128xf32>
    %12 = vector.shape_cast %11 : vector<128xf32> to vector<1x128xf32>
    %cst_8 = arith.constant 8.000000e+00 : f32
    %13 = vector.broadcast %cst_8 : f32 to vector<1x128xf32>
    %14 = arith.divf %12, %13 : vector<1x128xf32>
    %cst_9 = arith.constant 9.99999974E-6 : f32
    %15 = vector.broadcast %cst_9 : f32 to vector<1x128xf32>
    %16 = arith.addf %14, %15 : vector<1x128xf32>
    %17 = math.sqrt %16 : vector<1x128xf32>
    %18 = vector.broadcast %7 : vector<1x128xf32> to vector<8x128xf32>
    %19 = arith.subf %1, %18 : vector<8x128xf32>
    %20 = arith.divf %2, %17 : vector<1x128xf32>
    %21 = vector.broadcast %20 : vector<1x128xf32> to vector<8x128xf32>
    %22 = arith.mulf %19, %21 : vector<8x128xf32>
    %23 = vector.broadcast %3 : vector<1x128xf32> to vector<8x128xf32>
    %24 = arith.addf %22, %23 : vector<8x128xf32>
    %c0_10 = arith.constant 0 : index
    %c0_11 = arith.constant 0 : index
    %25 = vector.load %arg5[%c0_10, %c0_11] : memref<32x8xf32, #tpu.memory_space<vmem>>, vector<32x8xf32>
    %cst_12 = arith.constant dense<0.000000e+00> : vector<32x128xf32>
    %26 = tpu.matmul %25, %24, %cst_12 {dimension_numbers = #tpu.dot_dimension_numbers<[1], [0], [0], [1], [0, 0, 1, 1], [], []>} : vector<32x8xf32>, vector<8x128xf32>, vector<32x128xf32> -> vector<32x128xf32>
    %c0_13 = arith.constant 0 : index
    %c0_14 = arith.constant 0 : index
    %27 = vector.load %arg6[%c0_13, %c0_14] : memref<32x1xf32, #tpu.memory_space<vmem>>, vector<32x1xf32>
    %28 = vector.broadcast %27 : vector<32x1xf32> to vector<32x128xf32>
    %29 = arith.addf %26, %28 : vector<32x128xf32>
    %cst_15 = arith.constant dense<0.000000e+00> : vector<128xf32>
    %30 = vector.multi_reduction <add>, %29, %cst_15 [0] : vector<32x128xf32> to vector<128xf32>
    %31 = vector.shape_cast %30 : vector<128xf32> to vector<1x128xf32>
    %cst_16 = arith.constant 3.200000e+01 : f32
    %32 = vector.broadcast %cst_16 : f32 to vector<1x128xf32>
    %33 = arith.divf %31, %32 : vector<1x128xf32>
    %34 = vector.broadcast %33 : vector<1x128xf32> to vector<32x128xf32>
    %35 = arith.subf %29, %34 : vector<32x128xf32>
    %36 = arith.mulf %35, %35 : vector<32x128xf32>
    %cst_17 = arith.constant dense<0.000000e+00> : vector<128xf32>
    %37 = vector.multi_reduction <add>, %36, %cst_17 [0] : vector<32x128xf32> to vector<128xf32>
    %38 = vector.shape_cast %37 : vector<128xf32> to vector<1x128xf32>
    %cst_18 = arith.constant 3.200000e+01 : f32
    %39 = vector.broadcast %cst_18 : f32 to vector<1x128xf32>
    %40 = arith.divf %38, %39 : vector<1x128xf32>
    %41 = vector.broadcast %33 : vector<1x128xf32> to vector<32x128xf32>
    %42 = arith.subf %29, %41 : vector<32x128xf32>
    %cst_19 = arith.constant 9.99999974E-6 : f32
    %43 = vector.broadcast %cst_19 : f32 to vector<1x128xf32>
    %44 = arith.addf %40, %43 : vector<1x128xf32>
    %45 = math.rsqrt %44 : vector<1x128xf32>
    %46 = vector.broadcast %45 : vector<1x128xf32> to vector<32x128xf32>
    %47 = arith.mulf %42, %46 : vector<32x128xf32>
    %48 = tpu.concatenate %47, %24 in 0 : vector<32x128xf32>, vector<8x128xf32> -> vector<40x128xf32>
    %c0_20 = arith.constant 0 : index
    %c0_21 = arith.constant 0 : index
    %49 = vector.load %arg7[%c0_20, %c0_21] : memref<32x40xf32, #tpu.memory_space<vmem>>, vector<32x40xf32>
    %cst_22 = arith.constant dense<0.000000e+00> : vector<32x128xf32>
    %50 = tpu.matmul %49, %48, %cst_22 {dimension_numbers = #tpu.dot_dimension_numbers<[1], [0], [0], [1], [0, 0, 1, 1], [], []>} : vector<32x40xf32>, vector<40x128xf32>, vector<32x128xf32> -> vector<32x128xf32>
    %c0_23 = arith.constant 0 : index
    %c0_24 = arith.constant 0 : index
    %51 = vector.load %arg8[%c0_23, %c0_24] : memref<32x1xf32, #tpu.memory_space<vmem>>, vector<32x1xf32>
    %52 = vector.broadcast %51 : vector<32x1xf32> to vector<32x128xf32>
    %53 = arith.addf %50, %52 : vector<32x128xf32>
    %cst_25 = arith.constant 0.707106769 : f32
    %54 = vector.broadcast %cst_25 : f32 to vector<32x128xf32>
    %55 = arith.mulf %53, %54 : vector<32x128xf32>
    %56 = math.absf %55 : vector<32x128xf32>
    %cst_26 = arith.constant 0.327591091 : f32
    %57 = vector.broadcast %cst_26 : f32 to vector<32x128xf32>
    %58 = arith.mulf %57, %56 : vector<32x128xf32>
    %cst_27 = arith.constant 1.000000e+00 : f32
    %59 = vector.broadcast %cst_27 : f32 to vector<32x128xf32>
    %60 = arith.addf %59, %58 : vector<32x128xf32>
    %61 = tpu.reciprocal %60 {approx = true} : vector<32x128xf32> -> vector<32x128xf32>
    %62 = arith.mulf %60, %61 : vector<32x128xf32>
    %cst_28 = arith.constant 2.000000e+00 : f32
    %63 = vector.broadcast %cst_28 : f32 to vector<32x128xf32>
    %64 = arith.subf %63, %62 : vector<32x128xf32>
    %65 = arith.mulf %61, %64 : vector<32x128xf32>
    %cst_29 = arith.constant 1.06140542 : f32
    %66 = vector.broadcast %cst_29 : f32 to vector<32x128xf32>
    %67 = arith.mulf %66, %65 : vector<32x128xf32>
    %cst_30 = arith.constant 1.45315206 : f32
    %68 = vector.broadcast %cst_30 : f32 to vector<32x128xf32>
    %69 = arith.subf %67, %68 : vector<32x128xf32>
    %70 = arith.mulf %69, %65 : vector<32x128xf32>
    %cst_31 = arith.constant 1.42141378 : f32
    %71 = vector.broadcast %cst_31 : f32 to vector<32x128xf32>
    %72 = arith.addf %70, %71 : vector<32x128xf32>
    %73 = arith.mulf %72, %65 : vector<32x128xf32>
    %cst_32 = arith.constant 0.284496725 : f32
    %74 = vector.broadcast %cst_32 : f32 to vector<32x128xf32>
    %75 = arith.subf %73, %74 : vector<32x128xf32>
    %76 = arith.mulf %75, %65 : vector<32x128xf32>
    %cst_33 = arith.constant 0.254829586 : f32
    %77 = vector.broadcast %cst_33 : f32 to vector<32x128xf32>
    %78 = arith.addf %76, %77 : vector<32x128xf32>
    %79 = arith.mulf %78, %65 : vector<32x128xf32>
    %cst_34 = arith.constant 0.000000e+00 : f32
    %80 = vector.broadcast %cst_34 : f32 to vector<32x128xf32>
    %81 = arith.subf %80, %55 : vector<32x128xf32>
    %82 = arith.mulf %81, %55 : vector<32x128xf32>
    %83 = math.exp %82 : vector<32x128xf32>
    %84 = arith.mulf %79, %83 : vector<32x128xf32>
    %cst_35 = arith.constant 1.000000e+00 : f32
    %85 = vector.broadcast %cst_35 : f32 to vector<32x128xf32>
    %86 = arith.subf %85, %84 : vector<32x128xf32>
    %cst_36 = arith.constant 0.000000e+00 : f32
    %87 = vector.broadcast %cst_36 : f32 to vector<32x128xf32>
    %88 = arith.cmpf oge, %55, %87 : vector<32x128xf32>
    %cst_37 = arith.constant 0.000000e+00 : f32
    %89 = vector.broadcast %cst_37 : f32 to vector<32x128xf32>
    %90 = arith.subf %89, %86 : vector<32x128xf32>
    %91 = arith.select %88, %86, %90 : vector<32x128xi1>, vector<32x128xf32>
    %cst_38 = arith.constant 5.000000e-01 : f32
    %92 = vector.broadcast %cst_38 : f32 to vector<32x128xf32>
    %93 = arith.mulf %92, %53 : vector<32x128xf32>
    %cst_39 = arith.constant 1.000000e+00 : f32
    %94 = vector.broadcast %cst_39 : f32 to vector<32x128xf32>
    %95 = arith.addf %94, %91 : vector<32x128xf32>
    %96 = arith.mulf %93, %95 : vector<32x128xf32>
    %c0_40 = arith.constant 0 : index
    %c0_41 = arith.constant 0 : index
    %97 = vector.load %arg9[%c0_40, %c0_41] : memref<8x32xf32, #tpu.memory_space<vmem>>, vector<8x32xf32>
    %cst_42 = arith.constant dense<0.000000e+00> : vector<8x128xf32>
    %98 = tpu.matmul %97, %96, %cst_42 {dimension_numbers = #tpu.dot_dimension_numbers<[1], [0], [0], [1], [0, 0, 1, 1], [], []>} : vector<8x32xf32>, vector<32x128xf32>, vector<8x128xf32> -> vector<8x128xf32>
    %c0_43 = arith.constant 0 : index
    %c0_44 = arith.constant 0 : index
    %99 = vector.load %arg10[%c0_43, %c0_44] : memref<8x1xf32, #tpu.memory_space<vmem>>, vector<8x1xf32>
    %100 = vector.broadcast %99 : vector<8x1xf32> to vector<8x128xf32>
    %101 = arith.addf %98, %100 : vector<8x128xf32>
    %102 = vector.broadcast %3 : vector<1x128xf32> to vector<8x128xf32>
    %103 = arith.subf %101, %102 : vector<8x128xf32>
    %cst_45 = arith.constant 1.000000e-10 : f32
    %104 = vector.broadcast %cst_45 : f32 to vector<1x128xf32>
    %105 = arith.addf %2, %104 : vector<1x128xf32>
    %106 = arith.divf %17, %105 : vector<1x128xf32>
    %107 = vector.broadcast %106 : vector<1x128xf32> to vector<8x128xf32>
    %108 = arith.mulf %103, %107 : vector<8x128xf32>
    %109 = vector.broadcast %7 : vector<1x128xf32> to vector<8x128xf32>
    %110 = arith.addf %108, %109 : vector<8x128xf32>
    %c0_46 = arith.constant 0 : index
    %c0_47 = arith.constant 0 : index
    %c0_48 = arith.constant 0 : index
    %111 = vector.load %arg11[%c0_46, %c0_47, %c0_48] : memref<1x8x128xf32, #tpu.memory_space<vmem>>, vector<1x8x128xf32>
    %112 = vector.shape_cast %111 : vector<1x8x128xf32> to vector<8x128xf32>
    %113 = vector.shape_cast %110 : vector<8x128xf32> to vector<1x8x128xf32>
    tpu.vector_store %arg11[%c0_46, %c0_47, %c0_48], %113 {strides = array<i32>} : memref<1x8x128xf32, #tpu.memory_space<vmem>>, vector<1x8x128xf32>,
    return
  }
  func.func @transform_0(%arg0: i32, %arg1: i32) -> (i32, i32, i32) {
    %c0_i32 = arith.constant 0 : i32
    %c0_i32_0 = arith.constant 0 : i32
    return %arg0, %c0_i32, %arg1 : i32, i32, i32
  }
  func.func @transform_1(%arg0: i32, %arg1: i32) -> (i32, i32) {
    %c0_i32 = arith.constant 0 : i32
    %c0_i32_0 = arith.constant 0 : i32
    return %c0_i32, %arg1 : i32, i32
  }
  func.func @transform_2(%arg0: i32, %arg1: i32) -> (i32, i32) {
    %c0_i32 = arith.constant 0 : i32
    %c0_i32_0 = arith.constant 0 : i32
    return %c0_i32, %arg1 : i32, i32
  }
  func.func @transform_3(%arg0: i32, %arg1: i32) -> (i32, i32) {
    %c0_i32 = arith.constant 0 : i32
    %c0_i32_0 = arith.constant 0 : i32
    %c0_i32_1 = arith.constant 0 : i32
    return %c0_i32, %c0_i32_0 : i32, i32
  }
  func.func @transform_4(%arg0: i32, %arg1: i32) -> (i32, i32) {
    %c0_i32 = arith.constant 0 : i32
    %c0_i32_0 = arith.constant 0 : i32
    %c0_i32_1 = arith.constant 0 : i32
    return %c0_i32, %c0_i32_0 : i32, i32
  }
  func.func @transform_5(%arg0: i32, %arg1: i32) -> (i32, i32) {
    %c0_i32 = arith.constant 0 : i32
    %c0_i32_0 = arith.constant 0 : i32
    %c0_i32_1 = arith.constant 0 : i32
    return %c0_i32, %c0_i32_0 : i32, i32
  }
  func.func @transform_6(%arg0: i32, %arg1: i32) -> (i32, i32) {
    %c0_i32 = arith.constant 0 : i32
    %c0_i32_0 = arith.constant 0 : i32
    %c0_i32_1 = arith.constant 0 : i32
    return %c0_i32, %c0_i32_0 : i32, i32
  }
  func.func @transform_7(%arg0: i32, %arg1: i32) -> (i32, i32) {
    %c0_i32 = arith.constant 0 : i32
    %c0_i32_0 = arith.constant 0 : i32
    %c0_i32_1 = arith.constant 0 : i32
    return %c0_i32, %c0_i32_0 : i32, i32
  }
  func.func @transform_8(%arg0: i32, %arg1: i32) -> (i32, i32) {
    %c0_i32 = arith.constant 0 : i32
    %c0_i32_0 = arith.constant 0 : i32
    %c0_i32_1 = arith.constant 0 : i32
    return %c0_i32, %c0_i32_0 : i32, i32
  }
  func.func @transform_9(%arg0: i32, %arg1: i32) -> (i32, i32, i32) {
    %c0_i32 = arith.constant 0 : i32
    %c0_i32_0 = arith.constant 0 : i32
    return %arg0, %c0_i32, %arg1 : i32, i32, i32
  }
}

</mosaic_0001>

<bundles_post_ra>
// kernel: tpu_custom_call.1
= control target key start
LH: loop header
LB: loop body
LE: loop exit
PB: predicated region body
PF: predicated region fallthrough
CT: control target
= control target key end

     0   :  { %14 = vsyncpa [#allocation3], 0  ;;  %s1600_s0 = inlined_call_operand.vmem [shape: f32[2,8,128], index: 0, kind: input, shape index: {}]   ;;  %s1601_s1 = inlined_call_operand.vmem [shape: f32[1,128], index: 1, kind: input, shape index: {}]   ;;  %s1602_s2 = inlined_call_operand.vmem [shape: f32[1,128], index: 2, kind: input, shape index: {}]   ;;  %s1603_s3 = inlined_call_operand.vmem [shape: f32[32,8], index: 3, kind: input, shape index: {}]   ;;  %s1604_s4 = inlined_call_operand.vmem [shape: f32[32,1], index: 4, kind: input, shape index: {}]   ;;  %s1605_s5 = inlined_call_operand.vmem [shape: f32[32,40], index: 5, kind: input, shape index: {}]   ;;  %s1606_s6 = inlined_call_operand.vmem [shape: f32[32,1], index: 6, kind: input, shape index: {}]   ;;  %s1607_s7 = inlined_call_operand.vmem [shape: f32[8,32], index: 7, kind: input, shape index: {}]   ;;  %s1608_s8 = inlined_call_operand.vmem [shape: f32[8,1], index: 8, kind: input, shape index: {}]   ;;  %s1609_s9 = inlined_call_operand.hbm [shape: f32[2,8,128], index: 9, kind: output, shape index: {}]  }
   0x1   :  { %16 = vsyncpa [#allocation3 + $0x1], 0  ;;  %s1349_s30 = smov 0   ;;  %s1351_s10 = smov 0  }
   0x2   :  { %s1353_s11 = smov 0   ;;  %s1355_s12 = smov 0  }
   0x3   :  { %s1357_s13 = smov 0   ;;  %s1359_s14 = smov 0  }
   0x4 LB: > { %s1030_s15 = sadd.s32 4294967295, %s1292_s14   ;;  %s1031_s16 = sadd.s32 4294967294, %s1292_s14   ;;  %s1292_s14 = sphi %s1359_s14, %s22_s14   ;;  %s1288_s13 = sphi %s1357_s13, %s1616_s13   ;;  %s1284_s12 = sphi %s1355_s12, %s1615_s12   ;;  %s1280_s11 = sphi %s1353_s11, %s1614_s11   ;;  %s1276_s10 = sphi %s1351_s10, %s1613_s10   ;;  %s1272_s30 = sphi %s1349_s30, %s1612_s30  }
   0x5   : > { %s34_s17 = sadd.s32 1, %s1288_s13  ;;  %s249_s18 = sadd.s32 1, %s1280_s11 }
   0x6   : > { %p36_p0 = scmp.ge.s32.totalorder %s34_s17, 2  ;;  %p259_p1 = scmp.ne.s32.totalorder %s1280_s11, %s1276_s10 }
   0x7   : > { %p260_p2 = scmp.eq.s32.totalorder %s1030_s15, 1  ;;  %p265_p3 = scmp.ne.s32.totalorder %s1276_s10, %s1272_s30 }
   0x8   : > { %s1618_s17 = smov (%p36_p0, %s34_s17), 0  ;;  %p266_p5 = scmp.eq.s32.totalorder %s1031_s16, 1 }
   0x9   : > { %p1389_p4 = por %p260_p2, %p259_p1  ;;  %s244_s20 = ssub.s32 %s1288_s13, %s1618_s17 }
   0xa   : > { %p1036_p6 = scmp.ge.s32.totalorder %s1292_s14, 1  ;;  %p247_p7 = scmp.eq.s32.totalorder %s244_s20, 0 }
   0xb   : > { %p1396_p8 = por %p266_p5, %p265_p3  ;;  %p324_p9 = scmp.lt.s32.totalorder %s1292_s14, 3 }
   0xc   : > { %s1402_s22 = scalar_select %p247_p7, %s1280_s11, %s249_s18  }
   0xd   : > { %p325_p10 = pnand %p1036_p6, %p324_p9 }
   0xe   : > { %p368_p11 = scmp.lt.s32.totalorder (!%p325_p10), %s1284_s12, 1  ;;  %v425_v0 = vld [vmem:[%s1603_s3] sm:$0xff] (!%p325_p10)  ;;  %vm453_vm0 = vcmask (!%p325_p10), 64512   ;;  %v431_v2 = vld [vmem:[%s1604_s4 + $0x10] sm:$0xff] (!%p325_p10)  ;;  %v1294_v3 = vmov (!%p325_p10), 0   ;;  %v430_v4 = vld [vmem:[%s1604_s4 + $0x8] sm:$0xff] (!%p325_p10)  ;;  %v412_v34 = vlaneseq (!%p325_p10) }
   0xf   : > { %328 = sbr.rel (%p325_p10) target bundleno = 897 (0x381), region = 56  ;;  %1082 = vmatprep.mubr.msk.f32.mxu0 (!%p325_p10), %vm453_vm0, %v425_v0  ;;  %v429_v1 = vld [vmem:[%s1604_s4] sm:$0xff] (!%p325_p10)  ;;  %1188 = vset.pattern.permute.xlu0 (!%p325_p10), %v1294_v3  ;;  %v432_v5 = vld [vmem:[%s1604_s4 + $0x18] sm:$0xff] (!%p325_p10)  ;;  %v591_v10 = vld [vmem:[%s1606_s6 + $0x8] sm:$0xff] (!%p325_p10)  ;;  %vm614_vm3 = vcmask (!%p325_p10), 326656   ;;  %vm1296_vm4 = vmmov (!%p325_p10), 0  }
  0x10   : > { %1189 = vset.pattern.permute.xlu1 (!%p325_p10), %v1294_v3  ;;  %435 = vperm.xlu0 (!%p325_p10), %1188, %v429_v1   ;;  %v590_v9 = vld [vmem:[%s1606_s6] sm:$0xff] (!%p325_p10)  ;;  %v592_v13 = vld [vmem:[%s1606_s6 + $0x10] sm:$0xff] (!%p325_p10)  ;;  %v593_v14 = vld [vmem:[%s1606_s6 + $0x18] sm:$0xff] (!%p325_p10)  ;;  %v1446_v35 = vshrl.u32 (!%p325_p10), %v412_v34, 7  ;;  %vm835_vm9 = vcmask (!%p325_p10), 261120   ;;  %s365_s24 = sand.u32 (!%p325_p10), 1, %s1276_s10  }
  0x11   : > { %445 = vperm.xlu1 (!%p325_p10), %1189, %v431_v2   ;;  %v829_v17 = vld [vmem:[%s1608_s8] sm:$0xff] (!%p325_p10)  ;;  %v426_v44 = vld [vmem:[%s1603_s3 + $0x8] sm:$0xff] (!%p325_p10)  ;;  %v427_v45 = vld [vmem:[%s1603_s3 + $0x10] sm:$0xff] (!%p325_p10)  ;;  %s1037_s26 = sshll.u32 (!%p325_p10), %s365_s24, 3  ;;  %s1058_s27 = sshll.u32 (!%p325_p10), %s1284_s12, 7 }
  0x12   : > { %v1451_v36 = vld [vmem:[%s1601_s1] sm:$0x1] (!%p325_p10)  ;;  %v414_v37 = vsub.s32 (!%p325_p10), 0, %v1446_v35  ;;  %v428_v46 = vld [vmem:[%s1603_s3 + $0x18] sm:$0xff] (!%p325_p10)  ;;  %v587_v34 = vld [vmem:[%s1605_s5 + $0x8] sm:$0xff] (!%p325_p10)  ;;  %s921_s18 = scalar_lea.sflag (!%p325_p10), [#allocation3], %s365_s24 }
  0x13   : > { %v1460_v41 = vld [vmem:[%s1602_s2] ss:$0 sm:$0xff] (!%p325_p10) }
  0x14   : > { %440 = vperm.xlu0 (!%p325_p10), %1188, %v430_v4   ;;  %v586_v47 = vld [vmem:[%s1605_s5] sm:$0xff] (!%p325_p10) }
  0x15   : > { %450 = vperm.xlu1 (!%p325_p10), %1189, %v432_v5   ;;  %1098 = vmatprep.mubr.msk.f32.mxu1 (!%p325_p10), %vm614_vm3, %v586_v47 }
  0x16   : > { %s369_s25 = scalar_select %p368_p11, %s1284_s12, 1 }
  0x17   : > { %s1298_s12 = smov [#allocation2]  }
  0x18   : > { %s1038_s15 = sshll.u32 %s369_s25, 3  ;;  %596 = vperm.xlu0 %1188, %v590_v9   ;;  %s367_s25 = scalar_lea.vmem [#allocation2], %s1037_s26 }
  0x19   : > { %s374_s20 = scalar_lea.vmem %s1600_s0, %s1038_s15  ;;  %601 = vperm.xlu1 %1189, %v591_v10   ;;  %s935_s28 = sshll.u32 %s367_s25, 4  ;;  %s1555_s28 = int_to_ptr.vmem [resolvable:$true] %s935_s28 }
  0x1a   : > { %v381_v6 = vld [vmem:[%s374_s20] sm:$0xff]  ;;  %s1553_s15 = scalar_lea.hbm %s1609_s9, %s1058_s27  ;;  %s1214_s20 = scalar_lea.vmem %s1555_s28, 128 }
  0x1b   : > { %v384_v7 = vrot.slane %v381_v6, 4  ;;  %p1215_p12 = scmp.ne.s32.totalorder %s1555_s28, %s1214_s20  ;;  %s1218_s23 = sshll.u32 %s1298_s12, 4  ;;  %s1219_s23 = int_to_ptr.vmem [resolvable:$false] %s1218_s23 }
  0x1c   : > { %606 = vperm.xlu0 %1188, %v592_v13   ;;  %s1220_s26 = scalar_lea.vmem %s1219_s23, 256  ;;  %p1221_p1 = scmp.lt.s32.totalorder %s1555_s28, %s1219_s23 }
  0x1d   : > { %v385_v8 = vadd.f32 %v384_v7, %v381_v6  ;;  %611 = vperm.xlu1 %1189, %v593_v14   ;;  %p1216_p13 = pnand %p1215_p12, %p1389_p4  ;;  %p1222_p2 = scmp.lt.s32.totalorder %s1220_s26, %s1214_s20 }
  0x1f   : > { %v386_v11 = vrot.slane %v385_v8, 2  ;;  %p1217_p0 = pneg %p1216_p13  ;;  %p1223_p3 = por %p1222_p2, %p1221_p1 }
  0x20   : > { %832 = vperm.xlu0 %1188, %v829_v17  }
  0x21   : > { %v387_v12 = vadd.f32 %v386_v11, %v385_v8  ;;  %p1224_p5 = pnand %p1223_p3, %p1217_p0 }
  0x23   : > { %v388_v15 = vrot.slane %v387_v12, 1 }
  0x25   : > { %v389_v16 = vadd.f32 %v388_v15, %v387_v12 }
  0x27   : > { %v1440_v18 = vmul.f32 0.125, %v389_v16 }
  0x29   : > { %v392_v19 = vsub.f32 %v381_v6, %v1440_v18 }
  0x2b   : > { %v393_v20 = vmul.f32 %v392_v19, %v392_v19 }
  0x2d   : > { %v394_v21 = vrot.slane %v393_v20, 4 }
  0x2f   : > { %v395_v22 = vadd.f32 %v394_v21, %v393_v20 }
  0x31   : > { %v396_v23 = vrot.slane %v395_v22, 2 }
  0x33   : > { %v397_v24 = vadd.f32 %v396_v23, %v395_v22 }
  0x35   : > { %v398_v25 = vrot.slane %v397_v24, 1 }
  0x37   : > { %v399_v26 = vadd.f32 %v398_v25, %v397_v24 }
  0x39   : > { %v400_v27 = vmul.f32 0.125, %v399_v26 }
  0x3b   : > { %v401_v28 = vadd.f32 1e-05, %v400_v27 }
  0x3d   : > { %1190 = vrsqrt.f32 %v401_v28  ;;  %vm404_vm1 = vcmp.eq.f32.partialorder %v401_v28, inf  ;;  %v407_v30 = vand.u32 2147483648, %v401_v28  ;;  %vm406_vm2 = vcmp.eq.f32.partialorder %v401_v28, 0.0 }
  0x47   : > { %v1191_v29 = vpop.eup %1190 }
  0x48   : > { %v403_v31 = vmul.f32 %v1191_v29, %v401_v28 }
  0x4a   : > { %v405_v32 = vsel %vm404_vm1, %v401_v28, %v403_v31 }
  0x4b   : > { %v1443_v33 = vsel %vm406_vm2, %v407_v30, %v405_v32 }
  0x4c   : > { %1192 = vrcp.f32 %v1443_v33 }
  0x56   : > { %v1193_v38 = vpop.eup %1192 }
  0x57   : > { %v410_v39 = vmul.f32 %v1193_v38, %v1451_v36  ;;  %v588_v38 = vld [vmem:[%s1605_s5 + $0x10] sm:$0xff] }
  0x59   : > { %v415_v40 = vrot.slane %v410_v39, %v414_v37  ;;  %v589_v39 = vld [vmem:[%s1605_s5 + $0x18] sm:$0xff] }
  0x5b   : > { %v417_v42 = vmul.f32 %v415_v40, %v392_v19  ;;  %v1295_v40 = vmov 0.0|0.0  }
  0x5d   : > { %v1463_v43 = vadd.f32 %v1460_v41, %v417_v42  ;;  %v1297_v42 = vmov 0.0  }
  0x5f   : > { %1080 = vmatprep.subr.mxu0 %v1463_v43 }
  0x60   : > { %1081 = vmatpush3.msra.mxu0 %v1463_v43 }
  0x61   : > { %1083 = vmatmul.mubr.msk.f32.vlgmr.msra.gmra.mrb[0].mxu0 %vm453_vm0, %v426_v44  ;;  %1123 = vmatprep.subr.bf16.mxu0 %v1295_v40 }
  0x62   : > { %1085 = vmatprep.mubr.msk.f32.mxu0 %vm453_vm0, %v427_v45 }
  0x65   : > { %1086 = vmatmul.mubr.msk.f32.gmra.mrb[2].mxu0 %vm453_vm0, %v428_v46 }
  0x66   : > { %1112 = vmatprep.mubr.msk.f32.mxu0 %vm1296_vm4, %v1297_v42 }
  0x8f   : > { %v436_v48 = vpop.permute.xlu0 %435 }
  0x90   : > { %v446_v51 = vpop.permute.xlu1 %445 }
  0x93   : > { %v441_v49 = vpop.permute.xlu0 %440 }
  0x94   : > { %v451_v59 = vpop.permute.xlu1 %450 }
  0x97   : > { %v597_v45 = vpop.permute.xlu0 %596 }
  0x98   : > { %v602_v44 = vpop.permute.xlu1 %601 }
 0x134   : > { %v1084_v50 = vpop.f32.mrb[0].mxu0 }
 0x135   : > { %v538_v52 = vadd.f32 %v1084_v50, %v441_v49  ;;  %v532_v53 = vpop.f32.mrb[1].mxu0  ;;  %v612_v50 = vpop.permute.xlu1 %611 }
 0x136   : > { %v533_v54 = vadd.f32 %v532_v53, %v436_v48  ;;  %v607_v53 = vpop.permute.xlu0 %606 }
 0x138   : > { %v551_v55 = vadd.f32 %v538_v52, %v533_v54  ;;  %v1087_v56 = vpop.f32.mrb[2].mxu0 }
 0x139   : > { %v542_v57 = vpop.f32.mrb[3].mxu0  ;;  %v548_v60 = vadd.f32 %v1087_v56, %v451_v59 }
 0x13a   : > { %v543_v58 = vadd.f32 %v542_v57, %v446_v51 }
 0x13c   : > { %v552_v61 = vadd.f32 %v551_v55, %v543_v58 }
 0x13e   : > { %v553_v62 = vadd.f32 %v552_v61, %v548_v60 }
 0x140   : > { %v554_v63 = vrot.slane %v553_v62, 4 }
 0x142   : > { %v555_v0 = vadd.f32 %v554_v63, %v553_v62 }
 0x144   : > { %v556_v1 = vrot.slane %v555_v0, 2 }
 0x146   : > { %v557_v2 = vadd.f32 %v556_v1, %v555_v0 }
 0x148   : > { %v558_v3 = vrot.slane %v557_v2, 1 }
 0x14a   : > { %v559_v4 = vadd.f32 %v558_v3, %v557_v2 }
 0x14c   : > { %v561_v5 = vmul.f32 0.03125, %v559_v4 }
 0x14e   : > { %v562_v6 = vsub.f32 %v533_v54, %v561_v5  ;;  %v563_v7 = vsub.f32 %v538_v52, %v561_v5  ;;  %v564_v8 = vsub.f32 %v543_v58, %v561_v5  ;;  %v565_v9 = vsub.f32 %v548_v60, %v561_v5 }
 0x150   : > { %v566_v10 = vmul.f32 %v562_v6, %v562_v6  ;;  %v567_v11 = vmul.f32 %v563_v7, %v563_v7  ;;  %v568_v12 = vmul.f32 %v564_v8, %v564_v8  ;;  %v569_v14 = vmul.f32 %v565_v9, %v565_v9 }
 0x152   : > { %v570_v13 = vadd.f32 %v567_v11, %v566_v10 }
 0x154   : > { %v571_v15 = vadd.f32 %v570_v13, %v568_v12 }
 0x156   : > { %v572_v16 = vadd.f32 %v571_v15, %v569_v14 }
 0x158   : > { %v573_v17 = vrot.slane %v572_v16, 4 }
 0x15a   : > { %v574_v19 = vadd.f32 %v573_v17, %v572_v16 }
 0x15c   : > { %v575_v20 = vrot.slane %v574_v19, 2 }
 0x15e   : > { %v576_v21 = vadd.f32 %v575_v20, %v574_v19 }
 0x160   : > { %v577_v22 = vrot.slane %v576_v21, 1 }
 0x162   : > { %v578_v23 = vadd.f32 %v577_v22, %v576_v21 }
 0x164   : > { %v579_v24 = vmul.f32 0.03125, %v578_v23 }
 0x166   : > { %v580_v25 = vadd.f32 1e-05, %v579_v24 }
 0x168   : > { %1194 = vrsqrt.f32 %v580_v25 }
 0x172   : > { %v1195_v26 = vpop.eup %1194 }
 0x173   : > { %v584_v27 = vmul.f32 %v1195_v26, %v564_v8  ;;  %v582_v28 = vmul.f32 %v1195_v26, %v562_v6  ;;  %v583_v29 = vmul.f32 %v1195_v26, %v563_v7  ;;  %v585_v30 = vmul.f32 %v1195_v26, %v565_v9 }
 0x175   : > { %v1115_v31 = vpack.c.bf16 %v583_v29, %v582_v28  ;;  %v1119_v32 = vpack.c.bf16 %v585_v30, %v584_v27 }
 0x177   : > { %1116 = vmatprep.subr.bf16.mxu1 %v1115_v31 }
 0x178   : > { %1118 = vmatpush3.bf16.msra.mxu1 %v1115_v31 }
 0x179   : > { %1120 = vmatprep.subr.bf16.mxu1 %v1119_v32 }
 0x17c   : > { %1122 = vmatpush3.bf16.msra.mxu1 %v1119_v32 }
 0x17d   : > { %1096 = vmatprep.subr.mxu1 %v1463_v43 }
 0x180   : > { %1097 = vmatpush3.msra.mxu1 %v1463_v43 }
 0x181   : > { %1099 = vmatmul.mubr.msk.f32.vlgmr.msra.gmra.mrb[0].mxu1 %vm614_vm3, %v587_v34 }
 0x182   : > { %1101 = vmatprep.mubr.msk.f32.mxu1 %vm614_vm3, %v588_v38 }
 0x185   : > { %1102 = vmatmul.mubr.msk.f32.gmra.mrb[2].mxu1 %vm614_vm3, %v589_v39 }
 0x254   : > { %v1100_v46 = vpop.f32.mrb[0].mxu1 }
 0x255   : > { %v1498_v43 = vadd.f32 %v1100_v46, %v602_v44  ;;  %v693_v47 = vpop.f32.mrb[1].mxu1 }
 0x256   : > { %v1500_v48 = vadd.f32 %v693_v47, %v597_v45 }
 0x257   : > { %v1503_v49 = vmul.f32 0.70710677, %v1498_v43 }
 0x258   : > { %v1506_v51 = vmul.f32 0.70710677, %v1500_v48  ;;  %v1103_v52 = vpop.f32.mrb[2].mxu1 }
 0x259   : > { %v717_v54 = vand.u32 2147483647, %v1503_v49  ;;  %v1509_v55 = vadd.f32 %v1103_v52, %v612_v50  ;;  %v703_v56 = vpop.f32.mrb[3].mxu1  ;;  %v781_v10 = vsub.f32 0.0, %v1503_v49  ;;  %vm805_vm5 = vcmp.ge.f32.partialorder %v1503_v49, 0.0 }
 0x25a   : > { %v716_v57 = vand.u32 2147483647, %v1506_v51  ;;  %v1512_v58 = vadd.f32 %v703_v56, %v607_v53  ;;  %v780_v14 = vsub.f32 0.0, %v1506_v51  ;;  %vm804_vm6 = vcmp.ge.f32.partialorder %v1506_v51, 0.0 }
 0x25b   : > { %v721_v59 = vmul.f32 0.3275911, %v717_v54  ;;  %v1515_v60 = vmul.f32 0.70710677, %v1509_v55  ;;  %v785_v20 = vmul.f32 %v781_v10, %v1503_v49 }
 0x25c   : > { %v720_v61 = vmul.f32 0.3275911, %v716_v57  ;;  %v1518_v62 = vmul.f32 0.70710677, %v1512_v58  ;;  %v784_v26 = vmul.f32 %v780_v14, %v1506_v51 }
 0x25d   : > { %v725_v63 = vadd.f32 1.0, %v721_v59  ;;  %v719_v0 = vand.u32 2147483647, %v1515_v60  ;;  %v783_v21 = vsub.f32 0.0, %v1515_v60  ;;  %v790_v32 = vmul.f32 1.442695, %v785_v20 }
 0x25e   : > { %v724_v1 = vadd.f32 1.0, %v720_v61  ;;  %v718_v2 = vand.u32 2147483647, %v1518_v62  ;;  %v782_v27 = vsub.f32 0.0, %v1518_v62  ;;  %v788_v45 = vmul.f32 1.442695, %v784_v26 }
 0x25f   : > { %1196 = vrcp.f32 %v725_v63  ;;  %v723_v3 = vmul.f32 0.3275911, %v719_v0  ;;  %v787_v34 = vmul.f32 %v783_v21, %v1515_v60  ;;  %vm807_vm7 = vcmp.ge.f32.partialorder %v1515_v60, 0.0 }
 0x260   : > { %v722_v4 = vmul.f32 0.3275911, %v718_v2  ;;  %1198 = vrcp.f32 %v724_v1  ;;  %v786_v46 = vmul.f32 %v782_v27, %v1518_v62  ;;  %vm806_vm8 = vcmp.ge.f32.partialorder %v1518_v62, 0.0 }
 0x261   : > { %v727_v5 = vadd.f32 1.0, %v723_v3  ;;  %v794_v54 = vmul.f32 1.442695, %v787_v34  ;;  %v910_v60 = vadd.f32 1e-10, %v1451_v36 }
 0x262   : > { %v726_v6 = vadd.f32 1.0, %v722_v4 }
 0x263   : > { %1200 = vrcp.f32 %v727_v5 }
 0x264   : > { %1202 = vrcp.f32 %v726_v6 }
 0x265   : > { %1204 = vpow2.f32 %v790_v32 }
 0x266   : > { %1206 = vpow2.f32 %v788_v45 }
 0x267   : > { %1208 = vpow2.f32 %v794_v54  ;;  %v816_v54 = vmul.f32 0.5, %v1500_v48 }
 0x269   : > { %v1197_v7 = vpop.eup %1196 }
 0x26a   : > { %v733_v8 = vmul.f32 %v1197_v7, %v725_v63  ;;  %v1199_v9 = vpop.eup %1198  ;;  %v792_v63 = vmul.f32 1.442695, %v786_v46 }
 0x26b   : > { %v732_v12 = vmul.f32 %v1199_v9, %v724_v1 }
 0x26c   : > { %v737_v11 = vsub.f32 2.0, %v733_v8  ;;  %1210 = vpow2.f32 %v792_v63 }
 0x26d   : > { %v1201_v13 = vpop.eup %1200  ;;  %v736_v16 = vsub.f32 2.0, %v732_v12  ;;  %1212 = vrcp.f32 %v910_v60 }
 0x26e   : > { %v741_v15 = vmul.f32 %v1197_v7, %v737_v11  ;;  %v735_v17 = vmul.f32 %v1201_v13, %v727_v5  ;;  %v1203_v19 = vpop.eup %1202 }
 0x26f   : > { %v740_v23 = vmul.f32 %v1199_v9, %v736_v16  ;;  %v734_v25 = vmul.f32 %v1203_v19, %v726_v6 }
 0x270   : > { %v745_v22 = vmul.f32 1.0614054, %v741_v15  ;;  %v739_v24 = vsub.f32 2.0, %v735_v17  ;;  %v1205_v17 = vpop.eup %1204 }
 0x271   : > { %v744_v29 = vmul.f32 1.0614054, %v740_v23  ;;  %v738_v31 = vsub.f32 2.0, %v734_v25 }
 0x272   : > { %v1049_v28 = vadd.f32 -1.4531521, %v745_v22  ;;  %v743_v30 = vmul.f32 %v1201_v13, %v739_v24  ;;  %v1207_v24 = vpop.eup %1206 }
 0x273   : > { %v1048_v39 = vadd.f32 -1.4531521, %v744_v29  ;;  %v742_v44 = vmul.f32 %v1203_v19, %v738_v31  ;;  %v1209_v29 = vpop.eup %1208 }
 0x274   : > { %v753_v38 = vmul.f32 %v1049_v28, %v741_v15  ;;  %v747_v42 = vmul.f32 1.0614054, %v743_v30 }
 0x275   : > { %v752_v50 = vmul.f32 %v1048_v39, %v740_v23  ;;  %v746_v53 = vmul.f32 1.0614054, %v742_v44 }
 0x276   : > { %v757_v47 = vadd.f32 1.4214138, %v753_v38  ;;  %v1051_v52 = vadd.f32 -1.4531521, %v747_v42  ;;  %v1211_v39 = vpop.eup %1210 }
 0x277   : > { %v756_v57 = vadd.f32 1.4214138, %v752_v50  ;;  %v1050_v61 = vadd.f32 -1.4531521, %v746_v53  ;;  %v1213_v62 = vpop.eup %1212 }
 0x278   : > { %v761_v56 = vmul.f32 %v757_v47, %v741_v15  ;;  %v755_v59 = vmul.f32 %v1051_v52, %v743_v30 }
 0x279   : > { %v760_v1 = vmul.f32 %v756_v57, %v740_v23  ;;  %v754_v3 = vmul.f32 %v1050_v61, %v742_v44 }
 0x27a   : > { %v1053_v0 = vadd.f32 -0.28449672, %v761_v56  ;;  %v759_v2 = vadd.f32 1.4214138, %v755_v59  ;;  %v819_v59 = vmul.f32 0.5, %v1509_v55  ;;  %v828_v55 = vld [vmem:[%s1607_s7] sm:$0xff] }
 0x27b   : > { %v1052_v5 = vadd.f32 -0.28449672, %v760_v1  ;;  %v758_v7 = vadd.f32 1.4214138, %v754_v3  ;;  %v833_v3 = vpop.permute.xlu0 %832 }
 0x27c   : > { %v769_v4 = vmul.f32 %v1053_v0, %v741_v15  ;;  %v763_v6 = vmul.f32 %v759_v2, %v743_v30  ;;  %v818_v0 = vmul.f32 0.5, %v1512_v58  ;;  %v912_v58 = vmul.f32 %v1213_v62, %v1443_v33 }
 0x27d   : > { %v768_v9 = vmul.f32 %v1052_v5, %v740_v23  ;;  %v762_v11 = vmul.f32 %v758_v7, %v742_v44 }
 0x27e   : > { %v773_v8 = vadd.f32 0.2548296, %v769_v4  ;;  %v1055_v10 = vadd.f32 -0.28449672, %v763_v6  ;;  %v916_v5 = vrot.slane %v912_v58, %v414_v37 }
 0x27f   : > { %v772_v13 = vadd.f32 0.2548296, %v768_v9  ;;  %v1054_v16 = vadd.f32 -0.28449672, %v762_v11 }
 0x280   : > { %v777_v12 = vmul.f32 %v773_v8, %v741_v15  ;;  %v771_v14 = vmul.f32 %v1055_v10, %v743_v30 }
 0x281   : > { %v776_v20 = vmul.f32 %v772_v13, %v740_v23  ;;  %v770_v22 = vmul.f32 %v1054_v16, %v742_v44  ;;  %v817_v23 = vmul.f32 0.5, %v1498_v43 }
 0x282   : > { %v797_v19 = vmul.f32 %v1205_v17, %v777_v12  ;;  %v775_v21 = vadd.f32 0.2548296, %v771_v14 }
 0x283   : > { %v796_v26 = vmul.f32 %v1207_v24, %v776_v20  ;;  %v774_v28 = vadd.f32 0.2548296, %v770_v22 }
 0x284   : > { %v801_v25 = vsub.f32 1.0, %v797_v19  ;;  %v779_v27 = vmul.f32 %v775_v21, %v743_v30 }
 0x285   : > { %v800_v32 = vsub.f32 1.0, %v796_v26  ;;  %v778_v38 = vmul.f32 %v774_v28, %v742_v44 }
 0x286   : > { %v809_v31 = vsub.f32 0.0, %v801_v25  ;;  %v799_v34 = vmul.f32 %v1209_v29, %v779_v27 }
 0x287   : > { %v808_v42 = vsub.f32 0.0, %v800_v32  ;;  %v798_v46 = vmul.f32 %v1211_v39, %v778_v38 }
 0x288   : > { %v813_v15 = vsel %vm805_vm5, %v801_v25, %v809_v31  ;;  %v803_v45 = vsub.f32 1.0, %v799_v34 }
 0x289   : > { %v821_v47 = vadd.f32 1.0, %v813_v15  ;;  %v812_v50 = vsel %vm804_vm6, %v800_v32, %v808_v42  ;;  %v802_v52 = vsub.f32 1.0, %v798_v46 }
 0x28a   : > { %v811_v30 = vsub.f32 0.0, %v803_v45  ;;  %v820_v56 = vadd.f32 1.0, %v812_v50 }
 0x28b   : > { %v825_v53 = vmul.f32 %v821_v47, %v817_v23  ;;  %v810_v49 = vsub.f32 0.0, %v802_v52 }
 0x28c   : > { %v815_v44 = vsel %vm807_vm7, %v803_v45, %v811_v30  ;;  %v824_v57 = vmul.f32 %v820_v56, %v816_v54 }
 0x28d   : > { %v823_v61 = vadd.f32 1.0, %v815_v44  ;;  %v814_v43 = vsel %vm806_vm8, %v802_v52, %v810_v49 }
 0x28e   : > { %v1124_v51 = vpack.c.bf16 %v825_v53, %v824_v57  ;;  %v822_v1 = vadd.f32 1.0, %v814_v43 }
 0x28f   : > { %v827_v63 = vmul.f32 %v823_v61, %v819_v59 }
 0x290   : > { %v826_v2 = vmul.f32 %v822_v1, %v818_v0  ;;  %1125 = vmatpush3.bf16.msra.mxu0 %v1124_v51 }
 0x291   : > { %1126 = vmatprep.subr.bf16.mxu0 %v1295_v40 }
 0x292   : > { %v1127_v48 = vpack.c.bf16 %v827_v63, %v826_v2 }
 0x294   : > { %1128 = vmatpush3.bf16.msra.mxu0 %v1127_v48 }
 0x297   : > { %1113 = vmatmul.mubr.msk.f32.vlgmr.msra.gmra.mrb[4].mxu0 %vm835_vm9, %v828_v55 }
 0x36a   : > { %v905_v4 = vpop.f32.mrb[4].mxu0 }
 0x36b   : > { %v906_v40 = vadd.f32 %v905_v4, %v833_v3  ;;  %v1114_v6 = vpop.f32.mrb[5].mxu0 }
 0x36d   : > { %v909_v7 = vsub.f32 %v906_v40, %v1460_v41 }
 0x36f   : > { %v917_v36 = vmul.f32 %v916_v5, %v909_v7 }
 0x371   : > { %v918_v8 = vadd.f32 %v917_v36, %v1440_v18 }
 0x373   : > { %919 = vst [vmem:[%s367_s25] sm:$0xff] %v918_v8 }
 0x374   : > { %1227 = shalt.err (!%p1224_p5)
}
 0x375   : > { %s1228_s24 = scalar_lea.hbm %s1553_s15, 128  ;;  %s1232_s29 = scalar_lea.hbm %s1609_s9, 256 }
 0x376   : > { %p1229_p6 = scmp.ne.s32.totalorder %s1553_s15, %s1228_s24  ;;  %p1233_p10 = scmp.lt.u32.totalorder %s1553_s15, %s1609_s9 }
 0x377   : > { %p1234_p11 = scmp.lt.u32.totalorder %s1232_s29, %s1228_s24  ;;  %p1236_p13 = scmp.lt.u32.totalorder %s1228_s24, %s1553_s15 }
 0x378   : > { %p1230_p7 = pnand %p1229_p6, %p1389_p4 }
 0x379   : > { %p1235_p12 = por %p1234_p11, %p1233_p10 }
 0x37a   : > { %p1231_p9 = pneg %p1230_p7 }
 0x37b   : > { %p1237_p0 = por %p1236_p13, %p1235_p12 }
 0x37d   : > { %p1238_p1 = pnand %p1237_p0, %p1231_p9 }
 0x37f   : > { %1241 = shalt.err (!%p1238_p1)
}
 0x380   : > { %1129 = dma.vmem_to_hbm [thread:$0]  (%p1389_p4), %s1555_s28, 128, %s1553_s15, %s921_s18  }
 0x381 PF: > { %p1135_p2 = scmp.ge.s32.totalorder %s1292_s14, 2  ;;  %s947_s20 = sand.u32 1, %s1272_s30  }
 0x382   : > { %s948_s23 = scalar_lea.sflag [#allocation3], %s947_s20 }
 0x383   : > { %p1132_p3 = pnand %p1135_p2, %p1396_p8 }
 0x385   : > { %1267 = dma.done.wait (!%p1132_p3), %s948_s23, 128  }
 0x386   : > { %1269 = vsyncadd (!%p1132_p3), %s948_s23, 4294967168  ;;  %s22_s14 = sadd.s32 1, %s1292_s14   ;;  %s1612_s30 = smov %s1276_s10 }
 0x387   : > { %p19_p5 = scmp.ge.s32.totalorder %s22_s14, 4   ;;  %s1613_s10 = smov %s1280_s11 }
 0x388   : > { %s1614_s11 = smov %s1402_s22  ;;  %s1615_s12 = smov %s1288_s13 }
 0x389   : > { %s1616_s13 = smov %s1618_s17  ;;  %21 = sbr.rel (!%p19_p5) target bundleno = 4 (0x4), region = 97 }
 0x390   :  { %953 = vsyncpa [#allocation3], 1 }
 0x391   :  { %955 = vsyncpa [#allocation3 + $0x1], 1 }

// kernel: tpu_custom_call.1
= control target key start
LH: loop header
LB: loop body
LE: loop exit
PB: predicated region body
PF: predicated region fallthrough
CT: control target
= control target key end

     0   :  { %14 = vsyncpa [#allocation3], 0  ;;  %s1600_s0 = inlined_call_operand.vmem [shape: f32[2,8,128], index: 0, kind: input, shape index: {}]   ;;  %s1601_s1 = inlined_call_operand.vmem [shape: f32[1,128], index: 1, kind: input, shape index: {}]   ;;  %s1602_s2 = inlined_call_operand.vmem [shape: f32[1,128], index: 2, kind: input, shape index: {}]   ;;  %s1603_s3 = inlined_call_operand.vmem [shape: f32[32,8], index: 3, kind: input, shape index: {}]   ;;  %s1604_s4 = inlined_call_operand.vmem [shape: f32[32,1], index: 4, kind: input, shape index: {}]   ;;  %s1605_s5 = inlined_call_operand.vmem [shape: f32[32,40], index: 5, kind: input, shape index: {}]   ;;  %s1606_s6 = inlined_call_operand.vmem [shape: f32[32,1], index: 6, kind: input, shape index: {}]   ;;  %s1607_s7 = inlined_call_operand.vmem [shape: f32[8,32], index: 7, kind: input, shape index: {}]   ;;  %s1608_s8 = inlined_call_operand.vmem [shape: f32[8,1], index: 8, kind: input, shape index: {}]   ;;  %s1609_s9 = inlined_call_operand.hbm [shape: f32[2,8,128], index: 9, kind: output, shape index: {}]  }
   0x1   :  { %16 = vsyncpa [#allocation3 + $0x1], 0  ;;  %s1349_s30 = smov 0   ;;  %s1351_s10 = smov 0  }
   0x2   :  { %s1353_s11 = smov 0   ;;  %s1355_s12 = smov 0  }
   0x3   :  { %s1357_s13 = smov 0   ;;  %s1359_s14 = smov 0  }
   0x4 LB: > { %s1030_s15 = sadd.s32 4294967295, %s1292_s14   ;;  %s1031_s16 = sadd.s32 4294967294, %s1292_s14   ;;  %s1292_s14 = sphi %s1359_s14, %s22_s14   ;;  %s1288_s13 = sphi %s1357_s13, %s1616_s13   ;;  %s1284_s12 = sphi %s1355_s12, %s1615_s12   ;;  %s1280_s11 = sphi %s1353_s11, %s1614_s11   ;;  %s1276_s10 = sphi %s1351_s10, %s1613_s10   ;;  %s1272_s30 = sphi %s1349_s30, %s1612_s30  }
   0x5   : > { %s34_s17 = sadd.s32 1, %s1288_s13  ;;  %s249_s18 = sadd.s32 1, %s1280_s11 }
   0x6   : > { %p36_p0 = scmp.ge.s32.totalorder %s34_s17, 2  ;;  %p259_p1 = scmp.ne.s32.totalorder %s1280_s11, %s1276_s10 }
   0x7   : > { %p260_p2 = scmp.eq.s32.totalorder %s1030_s15, 1  ;;  %p265_p3 = scmp.ne.s32.totalorder %s1276_s10, %s1272_s30 }
   0x8   : > { %s1618_s17 = smov (%p36_p0, %s34_s17), 0  ;;  %p266_p5 = scmp.eq.s32.totalorder %s1031_s16, 1 }
   0x9   : > { %p1389_p4 = por %p260_p2, %p259_p1  ;;  %s244_s20 = ssub.s32 %s1288_s13, %s1618_s17 }
   0xa   : > { %p1036_p6 = scmp.ge.s32.totalorder %s1292_s14, 1  ;;  %p247_p7 = scmp.eq.s32.totalorder %s244_s20, 0 }
   0xb   : > { %p1396_p8 = por %p266_p5, %p265_p3  ;;  %p324_p9 = scmp.lt.s32.totalorder %s1292_s14, 3 }
   0xc   : > { %s1402_s22 = scalar_select %p247_p7, %s1280_s11, %s249_s18  }
   0xd   : > { %p325_p10 = pnand %p1036_p6, %p324_p9 }
   0xe   : > { %p368_p11 = scmp.lt.s32.totalorder (!%p325_p10), %s1284_s12, 1  ;;  %v425_v0 = vld [vmem:[%s1603_s3] sm:$0xff] (!%p325_p10)  ;;  %vm453_vm0 = vcmask (!%p325_p10), 64512   ;;  %v431_v2 = vld [vmem:[%s1604_s4 + $0x10] sm:$0xff] (!%p325_p10)  ;;  %v1294_v3 = vmov (!%p325_p10), 0   ;;  %v430_v4 = vld [vmem:[%s1604_s4 + $0x8] sm:$0xff] (!%p325_p10)  ;;  %v412_v34 = vlaneseq (!%p325_p10) }
   0xf   : > { %328 = sbr.rel (%p325_p10) target bundleno = 897 (0x381), region = 56  ;;  %1082 = vmatprep.mubr.msk.f32.mxu0 (!%p325_p10), %vm453_vm0, %v425_v0  ;;  %v429_v1 = vld [vmem:[%s1604_s4] sm:$0xff] (!%p325_p10)  ;;  %1188 = vset.pattern.permute.xlu0 (!%p325_p10), %v1294_v3  ;;  %v432_v5 = vld [vmem:[%s1604_s4 + $0x18] sm:$0xff] (!%p325_p10)  ;;  %v591_v10 = vld [vmem:[%s1606_s6 + $0x8] sm:$0xff] (!%p325_p10)  ;;  %vm614_vm3 = vcmask (!%p325_p10), 326656   ;;  %vm1296_vm4 = vmmov (!%p325_p10), 0  }
  0x10   : > { %1189 = vset.pattern.permute.xlu1 (!%p325_p10), %v1294_v3  ;;  %435 = vperm.xlu0 (!%p325_p10), %1188, %v429_v1   ;;  %v590_v9 = vld [vmem:[%s1606_s6] sm:$0xff] (!%p325_p10)  ;;  %v592_v13 = vld [vmem:[%s1606_s6 + $0x10] sm:$0xff] (!%p325_p10)  ;;  %v593_v14 = vld [vmem:[%s1606_s6 + $0x18] sm:$0xff] (!%p325_p10)  ;;  %v1446_v35 = vshrl.u32 (!%p325_p10), %v412_v34, 7  ;;  %vm835_vm9 = vcmask (!%p325_p10), 261120   ;;  %s365_s24 = sand.u32 (!%p325_p10), 1, %s1276_s10  }
  0x11   : > { %445 = vperm.xlu1 (!%p325_p10), %1189, %v431_v2   ;;  %v829_v17 = vld [vmem:[%s1608_s8] sm:$0xff] (!%p325_p10)  ;;  %v426_v44 = vld [vmem:[%s1603_s3 + $0x8] sm:$0xff] (!%p325_p10)  ;;  %v427_v45 = vld [vmem:[%s1603_s3 + $0x10] sm:$0xff] (!%p325_p10)  ;;  %s1037_s26 = sshll.u32 (!%p325_p10), %s365_s24, 3  ;;  %s1058_s27 = sshll.u32 (!%p325_p10), %s1284_s12, 7 }
  0x12   : > { %v1451_v36 = vld [vmem:[%s1601_s1] sm:$0x1] (!%p325_p10)  ;;  %v414_v37 = vsub.s32 (!%p325_p10), 0, %v1446_v35  ;;  %v428_v46 = vld [vmem:[%s1603_s3 + $0x18] sm:$0xff] (!%p325_p10)  ;;  %v587_v34 = vld [vmem:[%s1605_s5 + $0x8] sm:$0xff] (!%p325_p10)  ;;  %s921_s18 = scalar_lea.sflag (!%p325_p10), [#allocation3], %s365_s24 }
  0x13   : > { %v1460_v41 = vld [vmem:[%s1602_s2] ss:$0 sm:$0xff] (!%p325_p10) }
  0x14   : > { %440 = vperm.xlu0 (!%p325_p10), %1188, %v430_v4   ;;  %v586_v47 = vld [vmem:[%s1605_s5] sm:$0xff] (!%p325_p10) }
  0x15   : > { %450 = vperm.xlu1 (!%p325_p10), %1189, %v432_v5   ;;  %1098 = vmatprep.mubr.msk.f32.mxu1 (!%p325_p10), %vm614_vm3, %v586_v47 }
  0x16   : > { %s369_s25 = scalar_select %p368_p11, %s1284_s12, 1 }
  0x17   : > { %s1298_s12 = smov [#allocation2]  }
  0x18   : > { %s1038_s15 = sshll.u32 %s369_s25, 3  ;;  %596 = vperm.xlu0 %1188, %v590_v9   ;;  %s367_s25 = scalar_lea.vmem [#allocation2], %s1037_s26 }
  0x19   : > { %s374_s20 = scalar_lea.vmem %s1600_s0, %s1038_s15  ;;  %601 = vperm.xlu1 %1189, %v591_v10   ;;  %s935_s28 = sshll.u32 %s367_s25, 4  ;;  %s1555_s28 = int_to_ptr.vmem [resolvable:$true] %s935_s28 }
  0x1a   : > { %v381_v6 = vld [vmem:[%s374_s20] sm:$0xff]  ;;  %s1553_s15 = scalar_lea.hbm %s1609_s9, %s1058_s27  ;;  %s1214_s20 = scalar_lea.vmem %s1555_s28, 128 }
  0x1b   : > { %v384_v7 = vrot.slane %v381_v6, 4  ;;  %p1215_p12 = scmp.ne.s32.totalorder %s1555_s28, %s1214_s20  ;;  %s1218_s23 = sshll.u32 %s1298_s12, 4  ;;  %s1219_s23 = int_to_ptr.vmem [resolvable:$false] %s1218_s23 }
  0x1c   : > { %606 = vperm.xlu0 %1188, %v592_v13   ;;  %s1220_s26 = scalar_lea.vmem %s1219_s23, 256  ;;  %p1221_p1 = scmp.lt.s32.totalorder %s1555_s28, %s1219_s23 }
  0x1d   : > { %v385_v8 = vadd.f32 %v384_v7, %v381_v6  ;;  %611 = vperm.xlu1 %1189, %v593_v14   ;;  %p1216_p13 = pnand %p1215_p12, %p1389_p4  ;;  %p1222_p2 = scmp.lt.s32.totalorder %s1220_s26, %s1214_s20 }
  0x1f   : > { %v386_v11 = vrot.slane %v385_v8, 2  ;;  %p1217_p0 = pneg %p1216_p13  ;;  %p1223_p3 = por %p1222_p2, %p1221_p1 }
  0x20   : > { %832 = vperm.xlu0 %1188, %v829_v17  }
  0x21   : > { %v387_v12 = vadd.f32 %v386_v11, %v385_v8  ;;  %p1224_p5 = pnand %p1223_p3, %p1217_p0 }
  0x23   : > { %v388_v15 = vrot.slane %v387_v12, 1 }
  0x25   : > { %v389_v16 = vadd.f32 %v388_v15, %v387_v12 }
  0x27   : > { %v1440_v18 = vmul.f32 0.125, %v389_v16 }
  0x29   : > { %v392_v19 = vsub.f32 %v381_v6, %v1440_v18 }
  0x2b   : > { %v393_v20 = vmul.f32 %v392_v19, %v392_v19 }
  0x2d   : > { %v394_v21 = vrot.slane %v393_v20, 4 }
  0x2f   : > { %v395_v22 = vadd.f32 %v394_v21, %v393_v20 }
  0x31   : > { %v396_v23 = vrot.slane %v395_v22, 2 }
  0x33   : > { %v397_v24 = vadd.f32 %v396_v23, %v395_v22 }
  0x35   : > { %v398_v25 = vrot.slane %v397_v24, 1 }
  0x37   : > { %v399_v26 = vadd.f32 %v398_v25, %v397_v24 }
  0x39   : > { %v400_v27 = vmul.f32 0.125, %v399_v26 }
  0x3b   : > { %v401_v28 = vadd.f32 1e-05, %v400_v27 }
  0x3d   : > { %1190 = vrsqrt.f32 %v401_v28  ;;  %vm404_vm1 = vcmp.eq.f32.partialorder %v401_v28, inf  ;;  %v407_v30 = vand.u32 2147483648, %v401_v28  ;;  %vm406_vm2 = vcmp.eq.f32.partialorder %v401_v28, 0.0 }
  0x47   : > { %v1191_v29 = vpop.eup %1190 }
  0x48   : > { %v403_v31 = vmul.f32 %v1191_v29, %v401_v28 }
  0x4a   : > { %v405_v32 = vsel %vm404_vm1, %v401_v28, %v403_v31 }
  0x4b   : > { %v1443_v33 = vsel %vm406_vm2, %v407_v30, %v405_v32 }
  0x4c   : > { %1192 = vrcp.f32 %v1443_v33 }
  0x56   : > { %v1193_v38 = vpop.eup %1192 }
  0x57   : > { %v410_v39 = vmul.f32 %v1193_v38, %v1451_v36  ;;  %v588_v38 = vld [vmem:[%s1605_s5 + $0x10] sm:$0xff] }
  0x59   : > { %v415_v40 = vrot.slane %v410_v39, %v414_v37  ;;  %v589_v39 = vld [vmem:[%s1605_s5 + $0x18] sm:$0xff] }
  0x5b   : > { %v417_v42 = vmul.f32 %v415_v40, %v392_v19  ;;  %v1295_v40 = vmov 0.0|0.0  }
  0x5d   : > { %v1463_v43 = vadd.f32 %v1460_v41, %v417_v42  ;;  %v1297_v42 = vmov 0.0  }
  0x5f   : > { %1080 = vmatprep.subr.mxu0 %v1463_v43 }
  0x60   : > { %1081 = vmatpush3.msra.mxu0 %v1463_v43 }
  0x61   : > { %1083 = vmatmul.mubr.msk.f32.vlgmr.msra.gmra.mrb[0].mxu0 %vm453_vm0, %v426_v44  ;;  %1123 = vmatprep.subr.bf16.mxu0 %v1295_v40 }
  0x62   : > { %1085 = vmatprep.mubr.msk.f32.mxu0 %vm453_vm0, %v427_v45 }
  0x65   : > { %1086 = vmatmul.mubr.msk.f32.gmra.mrb[2].mxu0 %vm453_vm0, %v428_v46 }
  0x66   : > { %1112 = vmatprep.mubr.msk.f32.mxu0 %vm1296_vm4, %v1297_v42 }
  0x8f   : > { %v436_v48 = vpop.permute.xlu0 %435 }
  0x90   : > { %v446_v51 = vpop.permute.xlu1 %445 }
  0x93   : > { %v441_v49 = vpop.permute.xlu0 %440 }
  0x94   : > { %v451_v59 = vpop.permute.xlu1 %450 }
  0x97   : > { %v597_v45 = vpop.permute.xlu0 %596 }
  0x98   : > { %v602_v44 = vpop.permute.xlu1 %601 }
 0x134   : > { %v1084_v50 = vpop.f32.mrb[0].mxu0 }
 0x135   : > { %v538_v52 = vadd.f32 %v1084_v50, %v441_v49  ;;  %v532_v53 = vpop.f32.mrb[1].mxu0  ;;  %v612_v50 = vpop.permute.xlu1 %611 }
 0x136   : > { %v533_v54 = vadd.f32 %v532_v53, %v436_v48  ;;  %v607_v53 = vpop.permute.xlu0 %606 }
 0x138   : > { %v551_v55 = vadd.f32 %v538_v52, %v533_v54  ;;  %v1087_v56 = vpop.f32.mrb[2].mxu0 }
 0x139   : > { %v542_v57 = vpop.f32.mrb[3].mxu0  ;;  %v548_v60 = vadd.f32 %v1087_v56, %v451_v59 }
 0x13a   : > { %v543_v58 = vadd.f32 %v542_v57, %v446_v51 }
 0x13c   : > { %v552_v61 = vadd.f32 %v551_v55, %v543_v58 }
 0x13e   : > { %v553_v62 = vadd.f32 %v552_v61, %v548_v60 }
 0x140   : > { %v554_v63 = vrot.slane %v553_v62, 4 }
 0x142   : > { %v555_v0 = vadd.f32 %v554_v63, %v553_v62 }
 0x144   : > { %v556_v1 = vrot.slane %v555_v0, 2 }
 0x146   : > { %v557_v2 = vadd.f32 %v556_v1, %v555_v0 }
 0x148   : > { %v558_v3 = vrot.slane %v557_v2, 1 }
 0x14a   : > { %v559_v4 = vadd.f32 %v558_v3, %v557_v2 }
 0x14c   : > { %v561_v5 = vmul.f32 0.03125, %v559_v4 }
 0x14e   : > { %v562_v6 = vsub.f32 %v533_v54, %v561_v5  ;;  %v563_v7 = vsub.f32 %v538_v52, %v561_v5  ;;  %v564_v8 = vsub.f32 %v543_v58, %v561_v5  ;;  %v565_v9 = vsub.f32 %v548_v60, %v561_v5 }
 0x150   : > { %v566_v10 = vmul.f32 %v562_v6, %v562_v6  ;;  %v567_v11 = vmul.f32 %v563_v7, %v563_v7  ;;  %v568_v12 = vmul.f32 %v564_v8, %v564_v8  ;;  %v569_v14 = vmul.f32 %v565_v9, %v565_v9 }
 0x152   : > { %v570_v13 = vadd.f32 %v567_v11, %v566_v10 }
 0x154   : > { %v571_v15 = vadd.f32 %v570_v13, %v568_v12 }
 0x156   : > { %v572_v16 = vadd.f32 %v571_v15, %v569_v14 }
 0x158   : > { %v573_v17 = vrot.slane %v572_v16, 4 }
 0x15a   : > { %v574_v19 = vadd.f32 %v573_v17, %v572_v16 }
 0x15c   : > { %v575_v20 = vrot.slane %v574_v19, 2 }
 0x15e   : > { %v576_v21 = vadd.f32 %v575_v20, %v574_v19 }
 0x160   : > { %v577_v22 = vrot.slane %v576_v21, 1 }
 0x162   : > { %v578_v23 = vadd.f32 %v577_v22, %v576_v21 }
 0x164   : > { %v579_v24 = vmul.f32 0.03125, %v578_v23 }
 0x166   : > { %v580_v25 = vadd.f32 1e-05, %v579_v24 }
 0x168   : > { %1194 = vrsqrt.f32 %v580_v25 }
 0x172   : > { %v1195_v26 = vpop.eup %1194 }
 0x173   : > { %v584_v27 = vmul.f32 %v1195_v26, %v564_v8  ;;  %v582_v28 = vmul.f32 %v1195_v26, %v562_v6  ;;  %v583_v29 = vmul.f32 %v1195_v26, %v563_v7  ;;  %v585_v30 = vmul.f32 %v1195_v26, %v565_v9 }
 0x175   : > { %v1115_v31 = vpack.c.bf16 %v583_v29, %v582_v28  ;;  %v1119_v32 = vpack.c.bf16 %v585_v30, %v584_v27 }
 0x177   : > { %1116 = vmatprep.subr.bf16.mxu1 %v1115_v31 }
 0x178   : > { %1118 = vmatpush3.bf16.msra.mxu1 %v1115_v31 }
 0x179   : > { %1120 = vmatprep.subr.bf16.mxu1 %v1119_v32 }
 0x17c   : > { %1122 = vmatpush3.bf16.msra.mxu1 %v1119_v32 }
 0x17d   : > { %1096 = vmatprep.subr.mxu1 %v1463_v43 }
 0x180   : > { %1097 = vmatpush3.msra.mxu1 %v1463_v43 }
 0x181   : > { %1099 = vmatmul.mubr.msk.f32.vlgmr.msra.gmra.mrb[0].mxu1 %vm614_vm3, %v587_v34 }
 0x182   : > { %1101 = vmatprep.mubr.msk.f32.mxu1 %vm614_vm3, %v588_v38 }
 0x185   : > { %1102 = vmatmul.mubr.msk.f32.gmra.mrb[2].mxu1 %vm614_vm3, %v589_v39 }
 0x254   : > { %v1100_v46 = vpop.f32.mrb[0].mxu1 }
 0x255   : > { %v1498_v43 = vadd.f32 %v1100_v46, %v602_v44  ;;  %v693_v47 = vpop.f32.mrb[1].mxu1 }
 0x256   : > { %v1500_v48 = vadd.f32 %v693_v47, %v597_v45 }
 0x257   : > { %v1503_v49 = vmul.f32 0.70710677, %v1498_v43 }
 0x258   : > { %v1506_v51 = vmul.f32 0.70710677, %v1500_v48  ;;  %v1103_v52 = vpop.f32.mrb[2].mxu1 }
 0x259   : > { %v717_v54 = vand.u32 2147483647, %v1503_v49  ;;  %v1509_v55 = vadd.f32 %v1103_v52, %v612_v50  ;;  %v703_v56 = vpop.f32.mrb[3].mxu1  ;;  %v781_v10 = vsub.f32 0.0, %v1503_v49  ;;  %vm805_vm5 = vcmp.ge.f32.partialorder %v1503_v49, 0.0 }
 0x25a   : > { %v716_v57 = vand.u32 2147483647, %v1506_v51  ;;  %v1512_v58 = vadd.f32 %v703_v56, %v607_v53  ;;  %v780_v14 = vsub.f32 0.0, %v1506_v51  ;;  %vm804_vm6 = vcmp.ge.f32.partialorder %v1506_v51, 0.0 }
 0x25b   : > { %v721_v59 = vmul.f32 0.3275911, %v717_v54  ;;  %v1515_v60 = vmul.f32 0.70710677, %v1509_v55  ;;  %v785_v20 = vmul.f32 %v781_v10, %v1503_v49 }
 0x25c   : > { %v720_v61 = vmul.f32 0.3275911, %v716_v57  ;;  %v1518_v62 = vmul.f32 0.70710677, %v1512_v58  ;;  %v784_v26 = vmul.f32 %v780_v14, %v1506_v51 }
 0x25d   : > { %v725_v63 = vadd.f32 1.0, %v721_v59  ;;  %v719_v0 = vand.u32 2147483647, %v1515_v60  ;;  %v783_v21 = vsub.f32 0.0, %v1515_v60  ;;  %v790_v32 = vmul.f32 1.442695, %v785_v20 }
 0x25e   : > { %v724_v1 = vadd.f32 1.0, %v720_v61  ;;  %v718_v2 = vand.u32 2147483647, %v1518_v62  ;;  %v782_v27 = vsub.f32 0.0, %v1518_v62  ;;  %v788_v45 = vmul.f32 1.442695, %v784_v26 }
 0x25f   : > { %1196 = vrcp.f32 %v725_v63  ;;  %v723_v3 = vmul.f32 0.3275911, %v719_v0  ;;  %v787_v34 = vmul.f32 %v783_v21, %v1515_v60  ;;  %vm807_vm7 = vcmp.ge.f32.partialorder %v1515_v60, 0.0 }
 0x260   : > { %v722_v4 = vmul.f32 0.3275911, %v718_v2  ;;  %1198 = vrcp.f32 %v724_v1  ;;  %v786_v46 = vmul.f32 %v782_v27, %v1518_v62  ;;  %vm806_vm8 = vcmp.ge.f32.partialorder %v1518_v62, 0.0 }
 0x261   : > { %v727_v5 = vadd.f32 1.0, %v723_v3  ;;  %v794_v54 = vmul.f32 1.442695, %v787_v34  ;;  %v910_v60 = vadd.f32 1e-10, %v1451_v36 }
 0x262   : > { %v726_v6 = vadd.f32 1.0, %v722_v4 }
 0x263   : > { %1200 = vrcp.f32 %v727_v5 }
 0x264   : > { %1202 = vrcp.f32 %v726_v6 }
 0x265   : > { %1204 = vpow2.f32 %v790_v32 }
 0x266   : > { %1206 = vpow2.f32 %v788_v45 }
 0x267   : > { %1208 = vpow2.f32 %v794_v54  ;;  %v816_v54 = vmul.f32 0.5, %v1500_v48 }
 0x269   : > { %v1197_v7 = vpop.eup %1196 }
 0x26a   : > { %v733_v8 = vmul.f32 %v1197_v7, %v725_v63  ;;  %v1199_v9 = vpop.eup %1198  ;;  %v792_v63 = vmul.f32 1.442695, %v786_v46 }
 0x26b   : > { %v732_v12 = vmul.f32 %v1199_v9, %v724_v1 }
 0x26c   : > { %v737_v11 = vsub.f32 2.0, %v733_v8  ;;  %1210 = vpow2.f32 %v792_v63 }
 0x26d   : > { %v1201_v13 = vpop.eup %1200  ;;  %v736_v16 = vsub.f32 2.0, %v732_v12  ;;  %1212 = vrcp.f32 %v910_v60 }
 0x26e   : > { %v741_v15 = vmul.f32 %v1197_v7, %v737_v11  ;;  %v735_v17 = vmul.f32 %v1201_v13, %v727_v5  ;;  %v1203_v19 = vpop.eup %1202 }
 0x26f   : > { %v740_v23 = vmul.f32 %v1199_v9, %v736_v16  ;;  %v734_v25 = vmul.f32 %v1203_v19, %v726_v6 }
 0x270   : > { %v745_v22 = vmul.f32 1.0614054, %v741_v15  ;;  %v739_v24 = vsub.f32 2.0, %v735_v17  ;;  %v1205_v17 = vpop.eup %1204 }
 0x271   : > { %v744_v29 = vmul.f32 1.0614054, %v740_v23  ;;  %v738_v31 = vsub.f32 2.0, %v734_v25 }
 0x272   : > { %v1049_v28 = vadd.f32 -1.4531521, %v745_v22  ;;  %v743_v30 = vmul.f32 %v1201_v13, %v739_v24  ;;  %v1207_v24 = vpop.eup %1206 }
 0x273   : > { %v1048_v39 = vadd.f32 -1.4531521, %v744_v29  ;;  %v742_v44 = vmul.f32 %v1203_v19, %v738_v31  ;;  %v1209_v29 = vpop.eup %1208 }
 0x274   : > { %v753_v38 = vmul.f32 %v1049_v28, %v741_v15  ;;  %v747_v42 = vmul.f32 1.0614054, %v743_v30 }
 0x275   : > { %v752_v50 = vmul.f32 %v1048_v39, %v740_v23  ;;  %v746_v53 = vmul.f32 1.0614054, %v742_v44 }
 0x276   : > { %v757_v47 = vadd.f32 1.4214138, %v753_v38  ;;  %v1051_v52 = vadd.f32 -1.4531521, %v747_v42  ;;  %v1211_v39 = vpop.eup %1210 }
 0x277   : > { %v756_v57 = vadd.f32 1.4214138, %v752_v50  ;;  %v1050_v61 = vadd.f32 -1.4531521, %v746_v53  ;;  %v1213_v62 = vpop.eup %1212 }
 0x278   : > { %v761_v56 = vmul.f32 %v757_v47, %v741_v15  ;;  %v755_v59 = vmul.f32 %v1051_v52, %v743_v30 }
 0x279   : > { %v760_v1 = vmul.f32 %v756_v57, %v740_v23  ;;  %v754_v3 = vmul.f32 %v1050_v61, %v742_v44 }
 0x27a   : > { %v1053_v0 = vadd.f32 -0.28449672, %v761_v56  ;;  %v759_v2 = vadd.f32 1.4214138, %v755_v59  ;;  %v819_v59 = vmul.f32 0.5, %v1509_v55  ;;  %v828_v55 = vld [vmem:[%s1607_s7] sm:$0xff] }
 0x27b   : > { %v1052_v5 = vadd.f32 -0.28449672, %v760_v1  ;;  %v758_v7 = vadd.f32 1.4214138, %v754_v3  ;;  %v833_v3 = vpop.permute.xlu0 %832 }
 0x27c   : > { %v769_v4 = vmul.f32 %v1053_v0, %v741_v15  ;;  %v763_v6 = vmul.f32 %v759_v2, %v743_v30  ;;  %v818_v0 = vmul.f32 0.5, %v1512_v58  ;;  %v912_v58 = vmul.f32 %v1213_v62, %v1443_v33 }
 0x27d   : > { %v768_v9 = vmul.f32 %v1052_v5, %v740_v23  ;;  %v762_v11 = vmul.f32 %v758_v7, %v742_v44 }
 0x27e   : > { %v773_v8 = vadd.f32 0.2548296, %v769_v4  ;;  %v1055_v10 = vadd.f32 -0.28449672, %v763_v6  ;;  %v916_v5 = vrot.slane %v912_v58, %v414_v37 }
 0x27f   : > { %v772_v13 = vadd.f32 0.2548296, %v768_v9  ;;  %v1054_v16 = vadd.f32 -0.28449672, %v762_v11 }
 0x280   : > { %v777_v12 = vmul.f32 %v773_v8, %v741_v15  ;;  %v771_v14 = vmul.f32 %v1055_v10, %v743_v30 }
 0x281   : > { %v776_v20 = vmul.f32 %v772_v13, %v740_v23  ;;  %v770_v22 = vmul.f32 %v1054_v16, %v742_v44  ;;  %v817_v23 = vmul.f32 0.5, %v1498_v43 }
 0x282   : > { %v797_v19 = vmul.f32 %v1205_v17, %v777_v12  ;;  %v775_v21 = vadd.f32 0.2548296, %v771_v14 }
 0x283   : > { %v796_v26 = vmul.f32 %v1207_v24, %v776_v20  ;;  %v774_v28 = vadd.f32 0.2548296, %v770_v22 }
 0x284   : > { %v801_v25 = vsub.f32 1.0, %v797_v19  ;;  %v779_v27 = vmul.f32 %v775_v21, %v743_v30 }
 0x285   : > { %v800_v32 = vsub.f32 1.0, %v796_v26  ;;  %v778_v38 = vmul.f32 %v774_v28, %v742_v44 }
 0x286   : > { %v809_v31 = vsub.f32 0.0, %v801_v25  ;;  %v799_v34 = vmul.f32 %v1209_v29, %v779_v27 }
 0x287   : > { %v808_v42 = vsub.f32 0.0, %v800_v32  ;;  %v798_v46 = vmul.f32 %v1211_v39, %v778_v38 }
 0x288   : > { %v813_v15 = vsel %vm805_vm5, %v801_v25, %v809_v31  ;;  %v803_v45 = vsub.f32 1.0, %v799_v34 }
 0x289   : > { %v821_v47 = vadd.f32 1.0, %v813_v15  ;;  %v812_v50 = vsel %vm804_vm6, %v800_v32, %v808_v42  ;;  %v802_v52 = vsub.f32 1.0, %v798_v46 }
 0x28a   : > { %v811_v30 = vsub.f32 0.0, %v803_v45  ;;  %v820_v56 = vadd.f32 1.0, %v812_v50 }
 0x28b   : > { %v825_v53 = vmul.f32 %v821_v47, %v817_v23  ;;  %v810_v49 = vsub.f32 0.0, %v802_v52 }
 0x28c   : > { %v815_v44 = vsel %vm807_vm7, %v803_v45, %v811_v30  ;;  %v824_v57 = vmul.f32 %v820_v56, %v816_v54 }
 0x28d   : > { %v823_v61 = vadd.f32 1.0, %v815_v44  ;;  %v814_v43 = vsel %vm806_vm8, %v802_v52, %v810_v49 }
 0x28e   : > { %v1124_v51 = vpack.c.bf16 %v825_v53, %v824_v57  ;;  %v822_v1 = vadd.f32 1.0, %v814_v43 }
 0x28f   : > { %v827_v63 = vmul.f32 %v823_v61, %v819_v59 }
 0x290   : > { %v826_v2 = vmul.f32 %v822_v1, %v818_v0  ;;  %1125 = vmatpush3.bf16.msra.mxu0 %v1124_v51 }
 0x291   : > { %1126 = vmatprep.subr.bf16.mxu0 %v1295_v40 }
 0x292   : > { %v1127_v48 = vpack.c.bf16 %v827_v63, %v826_v2 }
 0x294   : > { %1128 = vmatpush3.bf16.msra.mxu0 %v1127_v48 }
 0x297   : > { %1113 = vmatmul.mubr.msk.f32.vlgmr.msra.gmra.mrb[4].mxu0 %vm835_vm9, %v828_v55 }
 0x36a   : > { %v905_v4 = vpop.f32.mrb[4].mxu0 }
 0x36b   : > { %v906_v40 = vadd.f32 %v905_v4, %v833_v3  ;;  %v1114_v6 = vpop.f32.mrb[5].mxu0 }
 0x36d   : > { %v909_v7 = vsub.f32 %v906_v40, %v1460_v41 }
 0x36f   : > { %v917_v36 = vmul.f32 %v916_v5, %v909_v7 }
 0x371   : > { %v918_v8 = vadd.f32 %v917_v36, %v1440_v18 }
 0x373   : > { %919 = vst [vmem:[%s367_s25] sm:$0xff] %v918_v8 }
 0x374   : > { %1227 = shalt.err (!%p1224_p5)
}
 0x375   : > { %s1228_s24 = scalar_lea.hbm %s1553_s15, 128  ;;  %s1232_s29 = scalar_lea.hbm %s1609_s9, 256 }
 0x376   : > { %p1229_p6 = scmp.ne.s32.totalorder %s1553_s15, %s1228_s24  ;;  %p1233_p10 = scmp.lt.u32.totalorder %s1553_s15, %s1609_s9 }
 0x377   : > { %p1234_p11 = scmp.lt.u32.totalorder %s1232_s29, %s1228_s24  ;;  %p1236_p13 = scmp.lt.u32.totalorder %s1228_s24, %s1553_s15 }
 0x378   : > { %p1230_p7 = pnand %p1229_p6, %p1389_p4 }
 0x379   : > { %p1235_p12 = por %p1234_p11, %p1233_p10 }
 0x37a   : > { %p1231_p9 = pneg %p1230_p7 }
 0x37b   : > { %p1237_p0 = por %p1236_p13, %p1235_p12 }
 0x37d   : > { %p1238_p1 = pnand %p1237_p0, %p1231_p9 }
 0x37f   : > { %1241 = shalt.err (!%p1238_p1)
}
 0x380   : > { %1129 = dma.vmem_to_hbm [thread:$0]  (%p1389_p4), %s1555_s28, 128, %s1553_s15, %s921_s18  }
 0x381 PF: > { %p1135_p2 = scmp.ge.s32.totalorder %s1292_s14, 2  ;;  %s947_s20 = sand.u32 1, %s1272_s30  }
 0x382   : > { %s948_s23 = scalar_lea.sflag [#allocation3], %s947_s20 }
 0x383   : > { %p1132_p3 = pnand %p1135_p2, %p1396_p8 }
 0x385   : > { %1267 = dma.done.wait (!%p1132_p3), %s948_s23, 128  }
 0x386   : > { %1269 = vsyncadd (!%p1132_p3), %s948_s23, 4294967168  ;;  %s22_s14 = sadd.s32 1, %s1292_s14   ;;  %s1612_s30 = smov %s1276_s10 }
 0x387   : > { %p19_p5 = scmp.ge.s32.totalorder %s22_s14, 4   ;;  %s1613_s10 = smov %s1280_s11 }
 0x388   : > { %s1614_s11 = smov %s1402_s22  ;;  %s1615_s12 = smov %s1288_s13 }
 0x389   : > { %s1616_s13 = smov %s1618_s17  ;;  %21 = sbr.rel (!%p19_p5) target bundleno = 4 (0x4), region = 97 }
 0x390   :  { %953 = vsyncpa [#allocation3], 1 }
 0x391   :  { %955 = vsyncpa [#allocation3 + $0x1], 1 }

</bundles_post_ra>
